<compile_context>
chip_gen: v6e
topology: v6e:2x2x1
jax: 0.10.0
libtpu: 0.0.40
codegen_flags: <defaults>
</compile_context>

<pallas_src>
import math
import functools

import jax
import jax.numpy as jnp
from jax.experimental import pallas as pl
from jax.experimental.pallas import tpu as pltpu


# ---------------------------------------------------------------------------
# Fused kernel: change_length + *sqrt(D) + positional encoding + n_layers of
# post-LN TransformerEncoderLayer.  One batch CHUNK per grid program.
# ---------------------------------------------------------------------------
def fused_encoder_kernel(x_ref, wcl_ref, bcl_ref, pe_ref,
                         wqkvT_ref, bqkv_ref, woutT_ref, bout_ref,
                         g1_ref, be1_ref, w1T_ref, bf1_ref,
                         w2T_ref, bf2_ref, g2_ref, be2_ref,
                         o_ref, *, nheads, n_layers, b_chunk, scale):
    S, D = pe_ref.shape
    H = nheads
    hd = D // H
    eps = 1e-5  # PyTorch LayerNorm default

    # ---- change_length (Linear 1024 -> S along length axis) for the whole
    # ---- batch chunk at once (lane-batched RHS), fused with *= sqrt(D).
    # bf16 operands, f32 accumulation on the MXU.
    hall = jnp.dot(wcl_ref[...], x_ref[0],
                   preferred_element_type=jnp.float32)          # (S, Bc*D)
    hall = (hall + bcl_ref[...]) * scale                         # bias bcast over lanes

    pe = pe_ref[...]                                             # (S, D) f32
    # TODO(synk): dropout in PositionalEncoding / attention / FFN omitted
    # (eval-mode identity).

    for j in range(b_chunk):                     # static, tiny
        h = hall[:, j * D:(j + 1) * D] + pe      # (S, D) f32

        for l in range(n_layers):                # static, unrolled
            # ---- QKV projection for all heads at once: (S,D)@(D,3D) ----
            # qk_scale is already folded into the Q columns of wqkvT/bqkv.
            qkv = jnp.dot(h.astype(jnp.bfloat16), wqkvT_ref[l],
                          preferred_element_type=jnp.float32) + bqkv_ref[l]  # (S,3D)

            # ---- head-batched attention: (H, S, hd) tensors ----
            qh = jnp.stack([qkv[:, i * hd:(i + 1) * hd]
                            for i in range(H)], axis=0)                       # (H,S,hd)
            kh = jnp.stack([qkv[:, D + i * hd:D + (i + 1) * hd]
                            for i in range(H)], axis=0)
            vh = jnp.stack([qkv[:, 2 * D + i * hd:2 * D + (i + 1) * hd]
                            for i in range(H)], axis=0)

            sc = jnp.einsum('hqd,hkd->hqk', qh, kh,
                            preferred_element_type=jnp.float32)               # (H,S,S)
            sc = sc - jnp.max(sc, axis=-1, keepdims=True)
            p = jnp.exp(sc)
            # Exact division (not pl.reciprocal(approx=True)) per review's
            # numerics concern; cost is negligible at these sizes.
            p = p / jnp.sum(p, axis=-1, keepdims=True)
            ctx = jnp.einsum('hqk,hkd->hqd', p, vh,
                             preferred_element_type=jnp.float32)              # (H,S,hd)

            # Reassemble heads lane-aligned and do ONE output projection.
            ctx_sd = jnp.concatenate([ctx[i] for i in range(H)], axis=-1)     # (S, D)
            attn = jnp.dot(ctx_sd.astype(jnp.bfloat16), woutT_ref[l],
                           preferred_element_type=jnp.float32) + bout_ref[l]

            # ---- residual + LayerNorm1 (post-LN, biased variance) ----
            y = h + attn
            mu = jnp.mean(y, axis=-1, keepdims=True)
            var = jnp.mean((y - mu) ** 2, axis=-1, keepdims=True)
            y = (y - mu) * jax.lax.rsqrt(var + eps) * g1_ref[l] + be1_ref[l]

            # ---- FFN: Linear -> ReLU -> Linear ----
            f = jnp.dot(y.astype(jnp.bfloat16), w1T_ref[l],
                        preferred_element_type=jnp.float32) + bf1_ref[l]
            f = jnp.maximum(f, 0.0)
            f = jnp.dot(f.astype(jnp.bfloat16), w2T_ref[l],
                        preferred_element_type=jnp.float32) + bf2_ref[l]

            # ---- residual + LayerNorm2 ----
            z = y + f
            mu2 = jnp.mean(z, axis=-1, keepdims=True)
            var2 = jnp.mean((z - mu2) ** 2, axis=-1, keepdims=True)
            h = (z - mu2) * jax.lax.rsqrt(var2 + eps) * g2_ref[l] + be2_ref[l]

        # One dense store per batch element of this chunk.
        o_ref[j] = h.astype(o_ref.dtype)


# ---------------------------------------------------------------------------
# Setup (plain JAX): positional-encoding table and (stacked) parameters.
# ---------------------------------------------------------------------------
def positional_encoding(max_len, d_model):
    position = jnp.arange(max_len, dtype=jnp.float32)[:, None]
    div_term = jnp.exp(jnp.arange(0, d_model, 2, dtype=jnp.float32)
                       * (-math.log(10000.0) / d_model))
    pe = jnp.zeros((max_len, d_model), jnp.float32)
    pe = pe.at[:, 0::2].set(jnp.sin(position * div_term))
    pe = pe.at[:, 1::2].set(jnp.cos(position * div_term))
    return pe


def init_params(key, *, dec_hid_dim, max_len, nheads, n_layers, dim_feedfwd,
                in_len=1024):
    D, F, L = dec_hid_dim, dim_feedfwd, n_layers
    hd = D // nheads
    qk_scale = 1.0 / math.sqrt(hd)

    def nrm(k, shape, s=0.05):
        return (s * jax.random.normal(k, shape)).astype(jnp.float32)

    keys = jax.random.split(key, 8)

    # in_proj (q|k|v) weights/bias; fold qk scaling into the Q third at init.
    winT = nrm(keys[2], (L, D, 3 * D))
    bin_ = nrm(keys[3], (L, 1, 3 * D))
    winT = winT.at[:, :, :D].multiply(qk_scale)
    bin_ = bin_.at[:, :, :D].multiply(qk_scale)

    return {
        # change_length: nn.Linear(1024, max_len) — bf16 weight for MXU.
        "w_cl": nrm(keys[0], (max_len, in_len)).astype(jnp.bfloat16),
        "b_cl": nrm(keys[1], (max_len, 1)),      # bias as column for row bcast
        "pe": positional_encoding(max_len, D),
        # per-layer params stacked along a leading n_layers axis
        "wqkvT": winT.astype(jnp.bfloat16),      # in_proj_weight.T (scaled Q)
        "bqkv": bin_,                            # f32 bias (scaled Q)
        "woutT": nrm(keys[4], (L, D, D)).astype(jnp.bfloat16),
        "bout": nrm(keys[5], (L, 1, D)),
        "g1": jnp.ones((L, 1, D), jnp.float32),
        "be1": jnp.zeros((L, 1, D), jnp.float32),
        "w1T": nrm(keys[6], (L, D, F)).astype(jnp.bfloat16),
        "bf1": jnp.zeros((L, 1, F), jnp.float32),
        "w2T": nrm(keys[7], (L, F, D)).astype(jnp.bfloat16),
        "bf2": jnp.zeros((L, 1, D), jnp.float32),
        "g2": jnp.ones((L, 1, D), jnp.float32),
        "be2": jnp.zeros((L, 1, D), jnp.float32),
    }


# ---------------------------------------------------------------------------
# Wrapper: one pallas_call for the whole forward pass.
# ---------------------------------------------------------------------------
def transformer_encoder_forward(x, params, *, max_len, dec_hid_dim, nheads):
    B, L_in, D = x.shape
    S = max_len
    n_layers = params["wqkvT"].shape[0]
    scale = math.sqrt(dec_hid_dim)

    # Two programs when B is even (v7x megacore split; costs only one extra
    # ~0.35us grid step on single-TC v5e/v6e), otherwise a single program.
    n_prog = 2 if (B >= 2 and B % 2 == 0) else 1
    b_chunk = B // n_prog

    # Layout plumbing (wrapper-side): (B, L, D) -> (n_prog, L, Bc*D) so the
    # change_length matmul RHS is lane-batched over the chunk; bf16 operand.
    x_prep = (x.reshape(n_prog, b_chunk, L_in, D)
                .transpose(0, 2, 1, 3)
                .reshape(n_prog, L_in, b_chunk * D)
                .astype(jnp.bfloat16))

    def full_spec(arr):
        # Whole array resident in VMEM; constant block index across the grid
        # so the tile is DMA'd only once and stays resident.
        return pl.BlockSpec(arr.shape, lambda p, nd=arr.ndim: (0,) * nd)

    param_order = ["w_cl", "b_cl", "pe",
                   "wqkvT", "bqkv", "woutT", "bout",
                   "g1", "be1", "w1T", "bf1",
                   "w2T", "bf2", "g2", "be2"]

    kernel = functools.partial(fused_encoder_kernel,
                               nheads=nheads, n_layers=n_layers,
                               b_chunk=b_chunk, scale=scale)

    # NOTE: generate_square_subsequent_mask is computed but unused in the
    # reference forward (mask=None is passed), so it is intentionally skipped.
    out_bsd = pl.pallas_call(
        kernel,
        out_shape=jax.ShapeDtypeStruct((B, S, D), jnp.float32),
        grid_spec=pltpu.PrefetchScalarGridSpec(
            num_scalar_prefetch=0,
            grid=(n_prog,),
            in_specs=[pl.BlockSpec((1, L_in, b_chunk * D), lambda p: (p, 0, 0))]
                     + [full_spec(params[name]) for name in param_order],
            out_specs=pl.BlockSpec((b_chunk, S, D), lambda p: (p, 0, 0)),
        ),
        compiler_params=pltpu.CompilerParams(
            dimension_semantics=("parallel",)),  # megacore split (v7x)
    )(x_prep, *[params[name] for name in param_order])

    # Reference module returns sequence-first (S, B, D); wrapper-side transpose
    # (pure layout plumbing on a tiny array).
    return jnp.transpose(out_bsd, (1, 0, 2))


if __name__ == "__main__":
    # Small, module-consistent config.
    emb_dim = dec_hid_dim = 32
    nheads = 4
    max_len = 8
    n_xfmer_encoder_layers = 2
    dim_feedfwd = 64
    B = 2
    L_in = 1024  # hard-coded in nn.Linear(1024, max_len)

    key = jax.random.PRNGKey(0)
    k_x, k_p = jax.random.split(key)
    src_from_cnn = jax.random.normal(k_x, (B, L_in, dec_hid_dim), jnp.float32)

    params = init_params(k_p, dec_hid_dim=dec_hid_dim, max_len=max_len,
                         nheads=nheads, n_layers=n_xfmer_encoder_layers,
                         dim_feedfwd=dim_feedfwd, in_len=L_in)

    out = transformer_encoder_forward(src_from_cnn, params,
                                      max_len=max_len,
                                      dec_hid_dim=dec_hid_dim,
                                      nheads=nheads)
    jax.block_until_ready(out)
    assert out.shape == (max_len, B, dec_hid_dim)
    print("KERNEL_OK")
</pallas_src>

<mosaic_0001>
module attributes {stable_mosaic.version = 11 : i64} {
  func.func @fused_encoder_kernel(%arg0: i32, %arg1: memref<1x1024x32xbf16, #tpu.memory_space<vmem>>, %arg2: memref<8x1024xbf16, #tpu.memory_space<vmem>>, %arg3: memref<8x1xf32, #tpu.memory_space<vmem>>, %arg4: memref<8x32xf32, #tpu.memory_space<vmem>>, %arg5: memref<2x32x96xbf16, #tpu.memory_space<vmem>>, %arg6: memref<2x1x96xf32, #tpu.memory_space<vmem>>, %arg7: memref<2x32x32xbf16, #tpu.memory_space<vmem>>, %arg8: memref<2x1x32xf32, #tpu.memory_space<vmem>>, %arg9: memref<2x1x32xf32, #tpu.memory_space<vmem>>, %arg10: memref<2x1x32xf32, #tpu.memory_space<vmem>>, %arg11: memref<2x32x64xbf16, #tpu.memory_space<vmem>>, %arg12: memref<2x1x64xf32, #tpu.memory_space<vmem>>, %arg13: memref<2x64x32xbf16, #tpu.memory_space<vmem>>, %arg14: memref<2x1x32xf32, #tpu.memory_space<vmem>>, %arg15: memref<2x1x32xf32, #tpu.memory_space<vmem>>, %arg16: memref<2x1x32xf32, #tpu.memory_space<vmem>>, %arg17: memref<1x8x32xf32, #tpu.memory_space<vmem>>) attributes {dimension_semantics = [#tpu.dimension_semantics<parallel>], iteration_bounds = array<i64: 2>, scalar_prefetch = 0 : i64, scratch_operands = 0 : i64, tpu.core_type = #tpu.core_type<tc>, window_params = [{transform_indices = @transform_0, window_bounds = array<i64: 1, 1024, 32>}, {pipeline_mode = #tpu.pipeline_mode<synchronous>, transform_indices = @transform_1, window_bounds = array<i64: 8, 1024>}, {pipeline_mode = #tpu.pipeline_mode<synchronous>, transform_indices = @transform_2, window_bounds = array<i64: 8, 1>}, {pipeline_mode = #tpu.pipeline_mode<synchronous>, transform_indices = @transform_3, window_bounds = array<i64: 8, 32>}, {pipeline_mode = #tpu.pipeline_mode<synchronous>, transform_indices = @transform_4, window_bounds = array<i64: 2, 32, 96>}, {pipeline_mode = #tpu.pipeline_mode<synchronous>, transform_indices = @transform_5, window_bounds = array<i64: 2, 1, 96>}, {pipeline_mode = #tpu.pipeline_mode<synchronous>, transform_indices = @transform_6, window_bounds = array<i64: 2, 32, 32>}, {pipeline_mode = #tpu.pipeline_mode<synchronous>, transform_indices = @transform_7, window_bounds = array<i64: 2, 1, 32>}, {pipeline_mode = #tpu.pipeline_mode<synchronous>, transform_indices = @transform_8, window_bounds = array<i64: 2, 1, 32>}, {pipeline_mode = #tpu.pipeline_mode<synchronous>, transform_indices = @transform_9, window_bounds = array<i64: 2, 1, 32>}, {pipeline_mode = #tpu.pipeline_mode<synchronous>, transform_indices = @transform_10, window_bounds = array<i64: 2, 32, 64>}, {pipeline_mode = #tpu.pipeline_mode<synchronous>, transform_indices = @transform_11, window_bounds = array<i64: 2, 1, 64>}, {pipeline_mode = #tpu.pipeline_mode<synchronous>, transform_indices = @transform_12, window_bounds = array<i64: 2, 64, 32>}, {pipeline_mode = #tpu.pipeline_mode<synchronous>, transform_indices = @transform_13, window_bounds = array<i64: 2, 1, 32>}, {pipeline_mode = #tpu.pipeline_mode<synchronous>, transform_indices = @transform_14, window_bounds = array<i64: 2, 1, 32>}, {pipeline_mode = #tpu.pipeline_mode<synchronous>, transform_indices = @transform_15, window_bounds = array<i64: 2, 1, 32>}, {transform_indices = @transform_16, window_bounds = array<i64: 1, 8, 32>}]} {
    %c0 = arith.constant 0 : index
    %c0_0 = arith.constant 0 : index
    %0 = vector.load %arg2[%c0, %c0_0] : memref<8x1024xbf16, #tpu.memory_space<vmem>>, vector<8x1024xbf16>
    %c0_1 = arith.constant 0 : index
    %c0_2 = arith.constant 0 : index
    %c0_3 = arith.constant 0 : index
    %1 = vector.load %arg1[%c0_1, %c0_2, %c0_3] : memref<1x1024x32xbf16, #tpu.memory_space<vmem>>, vector<1x1024x32xbf16>
    %2 = vector.shape_cast %1 : vector<1x1024x32xbf16> to vector<1024x32xbf16>
    %cst = arith.constant dense<0.000000e+00> : vector<8x32xf32>
    %3 = tpu.matmul %0, %2, %cst {dimension_numbers = #tpu.dot_dimension_numbers<[1], [0], [0], [1], [0, 0, 1, 1], [], []>} : vector<8x1024xbf16>, vector<1024x32xbf16>, vector<8x32xf32> -> vector<8x32xf32>
    %c0_4 = arith.constant 0 : index
    %c0_5 = arith.constant 0 : index
    %4 = vector.load %arg3[%c0_4, %c0_5] : memref<8x1xf32, #tpu.memory_space<vmem>>, vector<8x1xf32>
    %5 = vector.broadcast %4 : vector<8x1xf32> to vector<8x32xf32>
    %6 = arith.addf %3, %5 : vector<8x32xf32>
    %cst_6 = arith.constant 5.65685415 : f32
    %7 = vector.broadcast %cst_6 : f32 to vector<8x32xf32>
    %8 = arith.mulf %6, %7 : vector<8x32xf32>
    %c0_7 = arith.constant 0 : index
    %c0_8 = arith.constant 0 : index
    %9 = vector.load %arg4[%c0_7, %c0_8] : memref<8x32xf32, #tpu.memory_space<vmem>>, vector<8x32xf32>
    %10 = arith.addf %8, %9 : vector<8x32xf32>
    %11 = arith.truncf %10 : vector<8x32xf32> to vector<8x32xbf16>
    %c0_9 = arith.constant 0 : index
    %c0_10 = arith.constant 0 : index
    %c0_11 = arith.constant 0 : index
    %12 = vector.load %arg5[%c0_9, %c0_10, %c0_11] : memref<2x32x96xbf16, #tpu.memory_space<vmem>>, vector<1x32x96xbf16>
    %13 = vector.shape_cast %12 : vector<1x32x96xbf16> to vector<32x96xbf16>
    %cst_12 = arith.constant dense<0.000000e+00> : vector<8x96xf32>
    %14 = tpu.matmul %11, %13, %cst_12 {dimension_numbers = #tpu.dot_dimension_numbers<[1], [0], [0], [1], [0, 0, 1, 1], [], []>} : vector<8x32xbf16>, vector<32x96xbf16>, vector<8x96xf32> -> vector<8x96xf32>
    %c0_13 = arith.constant 0 : index
    %c0_14 = arith.constant 0 : index
    %c0_15 = arith.constant 0 : index
    %15 = vector.load %arg6[%c0_13, %c0_14, %c0_15] : memref<2x1x96xf32, #tpu.memory_space<vmem>>, vector<1x1x96xf32>
    %16 = vector.shape_cast %15 : vector<1x1x96xf32> to vector<1x96xf32>
    %17 = vector.broadcast %16 : vector<1x96xf32> to vector<8x96xf32>
    %18 = arith.addf %14, %17 : vector<8x96xf32>
    %19 = vector.extract_strided_slice %18 {offsets = [0, 0], sizes = [8, 8], strides = [1, 1]} : vector<8x96xf32> to vector<8x8xf32>
    %20 = vector.extract_strided_slice %18 {offsets = [0, 8], sizes = [8, 8], strides = [1, 1]} : vector<8x96xf32> to vector<8x8xf32>
    %21 = vector.extract_strided_slice %18 {offsets = [0, 16], sizes = [8, 8], strides = [1, 1]} : vector<8x96xf32> to vector<8x8xf32>
    %22 = vector.extract_strided_slice %18 {offsets = [0, 24], sizes = [8, 8], strides = [1, 1]} : vector<8x96xf32> to vector<8x8xf32>
    %23 = vector.shape_cast %19 : vector<8x8xf32> to vector<1x8x8xf32>
    %24 = vector.shape_cast %20 : vector<8x8xf32> to vector<1x8x8xf32>
    %25 = vector.shape_cast %21 : vector<8x8xf32> to vector<1x8x8xf32>
    %26 = vector.shape_cast %22 : vector<8x8xf32> to vector<1x8x8xf32>
    %27 = tpu.concatenate %23, %24, %25, %26 in 0 : vector<1x8x8xf32>, vector<1x8x8xf32>, vector<1x8x8xf32>, vector<1x8x8xf32> -> vector<4x8x8xf32>
    %28 = vector.extract_strided_slice %18 {offsets = [0, 32], sizes = [8, 8], strides = [1, 1]} : vector<8x96xf32> to vector<8x8xf32>
    %29 = vector.extract_strided_slice %18 {offsets = [0, 40], sizes = [8, 8], strides = [1, 1]} : vector<8x96xf32> to vector<8x8xf32>
    %30 = vector.extract_strided_slice %18 {offsets = [0, 48], sizes = [8, 8], strides = [1, 1]} : vector<8x96xf32> to vector<8x8xf32>
    %31 = vector.extract_strided_slice %18 {offsets = [0, 56], sizes = [8, 8], strides = [1, 1]} : vector<8x96xf32> to vector<8x8xf32>
    %32 = vector.shape_cast %28 : vector<8x8xf32> to vector<1x8x8xf32>
    %33 = vector.shape_cast %29 : vector<8x8xf32> to vector<1x8x8xf32>
    %34 = vector.shape_cast %30 : vector<8x8xf32> to vector<1x8x8xf32>
    %35 = vector.shape_cast %31 : vector<8x8xf32> to vector<1x8x8xf32>
    %36 = tpu.concatenate %32, %33, %34, %35 in 0 : vector<1x8x8xf32>, vector<1x8x8xf32>, vector<1x8x8xf32>, vector<1x8x8xf32> -> vector<4x8x8xf32>
    %37 = vector.extract_strided_slice %18 {offsets = [0, 64], sizes = [8, 8], strides = [1, 1]} : vector<8x96xf32> to vector<8x8xf32>
    %38 = vector.extract_strided_slice %18 {offsets = [0, 72], sizes = [8, 8], strides = [1, 1]} : vector<8x96xf32> to vector<8x8xf32>
    %39 = vector.extract_strided_slice %18 {offsets = [0, 80], sizes = [8, 8], strides = [1, 1]} : vector<8x96xf32> to vector<8x8xf32>
    %40 = vector.extract_strided_slice %18 {offsets = [0, 88], sizes = [8, 8], strides = [1, 1]} : vector<8x96xf32> to vector<8x8xf32>
    %41 = vector.shape_cast %37 : vector<8x8xf32> to vector<1x8x8xf32>
    %42 = vector.shape_cast %38 : vector<8x8xf32> to vector<1x8x8xf32>
    %43 = vector.shape_cast %39 : vector<8x8xf32> to vector<1x8x8xf32>
    %44 = vector.shape_cast %40 : vector<8x8xf32> to vector<1x8x8xf32>
    %45 = tpu.concatenate %41, %42, %43, %44 in 0 : vector<1x8x8xf32>, vector<1x8x8xf32>, vector<1x8x8xf32>, vector<1x8x8xf32> -> vector<4x8x8xf32>
    "tpu.trace_start"() <{level = 10 : i32, message = "hqd,hkd->hqk"}> : () -> ()
    %cst_16 = arith.constant dense<0.000000e+00> : vector<4x8x8xf32>
    %46 = tpu.matmul %27, %36, %cst_16 {dimension_numbers = #tpu.dot_dimension_numbers<[2], [2], [1], [1], [0, 0, 0, 1, 1, 1], [0], [0]>} : vector<4x8x8xf32>, vector<4x8x8xf32>, vector<4x8x8xf32> -> vector<4x8x8xf32>
    "tpu.trace_stop"() : () -> ()
    %cst_17 = arith.constant dense<0xFF800000> : vector<4x8xf32>
    %47 = vector.multi_reduction <maximumf>, %46, %cst_17 [2] : vector<4x8x8xf32> to vector<4x8xf32>
    %48 = vector.shape_cast %47 : vector<4x8xf32> to vector<4x8x1xf32>
    %49 = vector.broadcast %48 : vector<4x8x1xf32> to vector<4x8x8xf32>
    %50 = arith.subf %46, %49 : vector<4x8x8xf32>
    %51 = math.exp %50 : vector<4x8x8xf32>
    %cst_18 = arith.constant dense<0.000000e+00> : vector<4x8xf32>
    %52 = vector.multi_reduction <add>, %51, %cst_18 [2] : vector<4x8x8xf32> to vector<4x8xf32>
    %53 = vector.shape_cast %52 : vector<4x8xf32> to vector<4x8x1xf32>
    %54 = vector.broadcast %53 : vector<4x8x1xf32> to vector<4x8x8xf32>
    %55 = arith.divf %51, %54 : vector<4x8x8xf32>
    "tpu.trace_start"() <{level = 10 : i32, message = "hqk,hkd->hqd"}> : () -> ()
    %cst_19 = arith.constant dense<0.000000e+00> : vector<4x8x8xf32>
    %56 = tpu.matmul %55, %45, %cst_19 {dimension_numbers = #tpu.dot_dimension_numbers<[2], [1], [1], [2], [0, 0, 0, 1, 1, 2], [0], [0]>} : vector<4x8x8xf32>, vector<4x8x8xf32>, vector<4x8x8xf32> -> vector<4x8x8xf32>
    "tpu.trace_stop"() : () -> ()
    %57 = vector.extract_strided_slice %56 {offsets = [0, 0, 0], sizes = [1, 8, 8], strides = [1, 1, 1]} : vector<4x8x8xf32> to vector<1x8x8xf32>
    %58 = vector.shape_cast %57 : vector<1x8x8xf32> to vector<8x8xf32>
    %59 = vector.extract_strided_slice %56 {offsets = [1, 0, 0], sizes = [1, 8, 8], strides = [1, 1, 1]} : vector<4x8x8xf32> to vector<1x8x8xf32>
    %60 = vector.shape_cast %59 : vector<1x8x8xf32> to vector<8x8xf32>
    %61 = vector.extract_strided_slice %56 {offsets = [2, 0, 0], sizes = [1, 8, 8], strides = [1, 1, 1]} : vector<4x8x8xf32> to vector<1x8x8xf32>
    %62 = vector.shape_cast %61 : vector<1x8x8xf32> to vector<8x8xf32>
    %63 = vector.extract_strided_slice %56 {offsets = [3, 0, 0], sizes = [1, 8, 8], strides = [1, 1, 1]} : vector<4x8x8xf32> to vector<1x8x8xf32>
    %64 = vector.shape_cast %63 : vector<1x8x8xf32> to vector<8x8xf32>
    %65 = tpu.concatenate %58, %60, %62, %64 in 1 : vector<8x8xf32>, vector<8x8xf32>, vector<8x8xf32>, vector<8x8xf32> -> vector<8x32xf32>
    %66 = arith.truncf %65 : vector<8x32xf32> to vector<8x32xbf16>
    %c0_20 = arith.constant 0 : index
    %c0_21 = arith.constant 0 : index
    %c0_22 = arith.constant 0 : index
    %67 = vector.load %arg7[%c0_20, %c0_21, %c0_22] : memref<2x32x32xbf16, #tpu.memory_space<vmem>>, vector<1x32x32xbf16>
    %68 = vector.shape_cast %67 : vector<1x32x32xbf16> to vector<32x32xbf16>
    %cst_23 = arith.constant dense<0.000000e+00> : vector<8x32xf32>
    %69 = tpu.matmul %66, %68, %cst_23 {dimension_numbers = #tpu.dot_dimension_numbers<[1], [0], [0], [1], [0, 0, 1, 1], [], []>} : vector<8x32xbf16>, vector<32x32xbf16>, vector<8x32xf32> -> vector<8x32xf32>
    %c0_24 = arith.constant 0 : index
    %c0_25 = arith.constant 0 : index
    %c0_26 = arith.constant 0 : index
    %70 = vector.load %arg8[%c0_24, %c0_25, %c0_26] : memref<2x1x32xf32, #tpu.memory_space<vmem>>, vector<1x1x32xf32>
    %71 = vector.shape_cast %70 : vector<1x1x32xf32> to vector<1x32xf32>
    %72 = vector.broadcast %71 : vector<1x32xf32> to vector<8x32xf32>
    %73 = arith.addf %69, %72 : vector<8x32xf32>
    %74 = arith.addf %10, %73 : vector<8x32xf32>
    %cst_27 = arith.constant dense<0.000000e+00> : vector<8xf32>
    %75 = vector.multi_reduction <add>, %74, %cst_27 [1] : vector<8x32xf32> to vector<8xf32>
    %76 = vector.shape_cast %75 : vector<8xf32> to vector<8x1xf32>
    %cst_28 = arith.constant 3.200000e+01 : f32
    %77 = vector.broadcast %cst_28 : f32 to vector<8x1xf32>
    %78 = arith.divf %76, %77 : vector<8x1xf32>
    %79 = vector.broadcast %78 : vector<8x1xf32> to vector<8x32xf32>
    %80 = arith.subf %74, %79 : vector<8x32xf32>
    %81 = arith.mulf %80, %80 : vector<8x32xf32>
    %cst_29 = arith.constant dense<0.000000e+00> : vector<8xf32>
    %82 = vector.multi_reduction <add>, %81, %cst_29 [1] : vector<8x32xf32> to vector<8xf32>
    %83 = vector.shape_cast %82 : vector<8xf32> to vector<8x1xf32>
    %cst_30 = arith.constant 3.200000e+01 : f32
    %84 = vector.broadcast %cst_30 : f32 to vector<8x1xf32>
    %85 = arith.divf %83, %84 : vector<8x1xf32>
    %86 = vector.broadcast %78 : vector<8x1xf32> to vector<8x32xf32>
    %87 = arith.subf %74, %86 : vector<8x32xf32>
    %cst_31 = arith.constant 9.99999974E-6 : f32
    %88 = vector.broadcast %cst_31 : f32 to vector<8x1xf32>
    %89 = arith.addf %85, %88 : vector<8x1xf32>
    %90 = math.rsqrt %89 : vector<8x1xf32>
    %91 = vector.broadcast %90 : vector<8x1xf32> to vector<8x32xf32>
    %92 = arith.mulf %87, %91 : vector<8x32xf32>
    %c0_32 = arith.constant 0 : index
    %c0_33 = arith.constant 0 : index
    %c0_34 = arith.constant 0 : index
    %93 = vector.load %arg9[%c0_32, %c0_33, %c0_34] : memref<2x1x32xf32, #tpu.memory_space<vmem>>, vector<1x1x32xf32>
    %94 = vector.shape_cast %93 : vector<1x1x32xf32> to vector<1x32xf32>
    %95 = vector.broadcast %94 : vector<1x32xf32> to vector<8x32xf32>
    %96 = arith.mulf %92, %95 : vector<8x32xf32>
    %c0_35 = arith.constant 0 : index
    %c0_36 = arith.constant 0 : index
    %c0_37 = arith.constant 0 : index
    %97 = vector.load %arg10[%c0_35, %c0_36, %c0_37] : memref<2x1x32xf32, #tpu.memory_space<vmem>>, vector<1x1x32xf32>
    %98 = vector.shape_cast %97 : vector<1x1x32xf32> to vector<1x32xf32>
    %99 = vector.broadcast %98 : vector<1x32xf32> to vector<8x32xf32>
    %100 = arith.addf %96, %99 : vector<8x32xf32>
    %101 = arith.truncf %100 : vector<8x32xf32> to vector<8x32xbf16>
    %c0_38 = arith.constant 0 : index
    %c0_39 = arith.constant 0 : index
    %c0_40 = arith.constant 0 : index
    %102 = vector.load %arg11[%c0_38, %c0_39, %c0_40] : memref<2x32x64xbf16, #tpu.memory_space<vmem>>, vector<1x32x64xbf16>
    %103 = vector.shape_cast %102 : vector<1x32x64xbf16> to vector<32x64xbf16>
    %cst_41 = arith.constant dense<0.000000e+00> : vector<8x64xf32>
    %104 = tpu.matmul %101, %103, %cst_41 {dimension_numbers = #tpu.dot_dimension_numbers<[1], [0], [0], [1], [0, 0, 1, 1], [], []>} : vector<8x32xbf16>, vector<32x64xbf16>, vector<8x64xf32> -> vector<8x64xf32>
    %c0_42 = arith.constant 0 : index
    %c0_43 = arith.constant 0 : index
    %c0_44 = arith.constant 0 : index
    %105 = vector.load %arg12[%c0_42, %c0_43, %c0_44] : memref<2x1x64xf32, #tpu.memory_space<vmem>>, vector<1x1x64xf32>
    %106 = vector.shape_cast %105 : vector<1x1x64xf32> to vector<1x64xf32>
    %107 = vector.broadcast %106 : vector<1x64xf32> to vector<8x64xf32>
    %108 = arith.addf %104, %107 : vector<8x64xf32>
    %cst_45 = arith.constant 0.000000e+00 : f32
    %109 = vector.broadcast %cst_45 : f32 to vector<8x64xf32>
    %110 = arith.maximumf %108, %109 : vector<8x64xf32>
    %111 = arith.truncf %110 : vector<8x64xf32> to vector<8x64xbf16>
    %c0_46 = arith.constant 0 : index
    %c0_47 = arith.constant 0 : index
    %c0_48 = arith.constant 0 : index
    %112 = vector.load %arg13[%c0_46, %c0_47, %c0_48] : memref<2x64x32xbf16, #tpu.memory_space<vmem>>, vector<1x64x32xbf16>
    %113 = vector.shape_cast %112 : vector<1x64x32xbf16> to vector<64x32xbf16>
    %cst_49 = arith.constant dense<0.000000e+00> : vector<8x32xf32>
    %114 = tpu.matmul %111, %113, %cst_49 {dimension_numbers = #tpu.dot_dimension_numbers<[1], [0], [0], [1], [0, 0, 1, 1], [], []>} : vector<8x64xbf16>, vector<64x32xbf16>, vector<8x32xf32> -> vector<8x32xf32>
    %c0_50 = arith.constant 0 : index
    %c0_51 = arith.constant 0 : index
    %c0_52 = arith.constant 0 : index
    %115 = vector.load %arg14[%c0_50, %c0_51, %c0_52] : memref<2x1x32xf32, #tpu.memory_space<vmem>>, vector<1x1x32xf32>
    %116 = vector.shape_cast %115 : vector<1x1x32xf32> to vector<1x32xf32>
    %117 = vector.broadcast %116 : vector<1x32xf32> to vector<8x32xf32>
    %118 = arith.addf %114, %117 : vector<8x32xf32>
    %119 = arith.addf %100, %118 : vector<8x32xf32>
    %cst_53 = arith.constant dense<0.000000e+00> : vector<8xf32>
    %120 = vector.multi_reduction <add>, %119, %cst_53 [1] : vector<8x32xf32> to vector<8xf32>
    %121 = vector.shape_cast %120 : vector<8xf32> to vector<8x1xf32>
    %cst_54 = arith.constant 3.200000e+01 : f32
    %122 = vector.broadcast %cst_54 : f32 to vector<8x1xf32>
    %123 = arith.divf %121, %122 : vector<8x1xf32>
    %124 = vector.broadcast %123 : vector<8x1xf32> to vector<8x32xf32>
    %125 = arith.subf %119, %124 : vector<8x32xf32>
    %126 = arith.mulf %125, %125 : vector<8x32xf32>
    %cst_55 = arith.constant dense<0.000000e+00> : vector<8xf32>
    %127 = vector.multi_reduction <add>, %126, %cst_55 [1] : vector<8x32xf32> to vector<8xf32>
    %128 = vector.shape_cast %127 : vector<8xf32> to vector<8x1xf32>
    %cst_56 = arith.constant 3.200000e+01 : f32
    %129 = vector.broadcast %cst_56 : f32 to vector<8x1xf32>
    %130 = arith.divf %128, %129 : vector<8x1xf32>
    %131 = vector.broadcast %123 : vector<8x1xf32> to vector<8x32xf32>
    %132 = arith.subf %119, %131 : vector<8x32xf32>
    %cst_57 = arith.constant 9.99999974E-6 : f32
    %133 = vector.broadcast %cst_57 : f32 to vector<8x1xf32>
    %134 = arith.addf %130, %133 : vector<8x1xf32>
    %135 = math.rsqrt %134 : vector<8x1xf32>
    %136 = vector.broadcast %135 : vector<8x1xf32> to vector<8x32xf32>
    %137 = arith.mulf %132, %136 : vector<8x32xf32>
    %c0_58 = arith.constant 0 : index
    %c0_59 = arith.constant 0 : index
    %c0_60 = arith.constant 0 : index
    %138 = vector.load %arg15[%c0_58, %c0_59, %c0_60] : memref<2x1x32xf32, #tpu.memory_space<vmem>>, vector<1x1x32xf32>
    %139 = vector.shape_cast %138 : vector<1x1x32xf32> to vector<1x32xf32>
    %140 = vector.broadcast %139 : vector<1x32xf32> to vector<8x32xf32>
    %141 = arith.mulf %137, %140 : vector<8x32xf32>
    %c0_61 = arith.constant 0 : index
    %c0_62 = arith.constant 0 : index
    %c0_63 = arith.constant 0 : index
    %142 = vector.load %arg16[%c0_61, %c0_62, %c0_63] : memref<2x1x32xf32, #tpu.memory_space<vmem>>, vector<1x1x32xf32>
    %143 = vector.shape_cast %142 : vector<1x1x32xf32> to vector<1x32xf32>
    %144 = vector.broadcast %143 : vector<1x32xf32> to vector<8x32xf32>
    %145 = arith.addf %141, %144 : vector<8x32xf32>
    %146 = arith.truncf %145 : vector<8x32xf32> to vector<8x32xbf16>
    %c1 = arith.constant 1 : index
    %c0_64 = arith.constant 0 : index
    %c0_65 = arith.constant 0 : index
    %147 = vector.load %arg5[%c1, %c0_64, %c0_65] : memref<2x32x96xbf16, #tpu.memory_space<vmem>>, vector<1x32x96xbf16>
    %148 = vector.shape_cast %147 : vector<1x32x96xbf16> to vector<32x96xbf16>
    %cst_66 = arith.constant dense<0.000000e+00> : vector<8x96xf32>
    %149 = tpu.matmul %146, %148, %cst_66 {dimension_numbers = #tpu.dot_dimension_numbers<[1], [0], [0], [1], [0, 0, 1, 1], [], []>} : vector<8x32xbf16>, vector<32x96xbf16>, vector<8x96xf32> -> vector<8x96xf32>
    %c1_67 = arith.constant 1 : index
    %c0_68 = arith.constant 0 : index
    %c0_69 = arith.constant 0 : index
    %150 = vector.load %arg6[%c1_67, %c0_68, %c0_69] : memref<2x1x96xf32, #tpu.memory_space<vmem>>, vector<1x1x96xf32>
    %151 = vector.shape_cast %150 : vector<1x1x96xf32> to vector<1x96xf32>
    %152 = vector.broadcast %151 : vector<1x96xf32> to vector<8x96xf32>
    %153 = arith.addf %149, %152 : vector<8x96xf32>
    %154 = vector.extract_strided_slice %153 {offsets = [0, 0], sizes = [8, 8], strides = [1, 1]} : vector<8x96xf32> to vector<8x8xf32>
    %155 = vector.extract_strided_slice %153 {offsets = [0, 8], sizes = [8, 8], strides = [1, 1]} : vector<8x96xf32> to vector<8x8xf32>
    %156 = vector.extract_strided_slice %153 {offsets = [0, 16], sizes = [8, 8], strides = [1, 1]} : vector<8x96xf32> to vector<8x8xf32>
    %157 = vector.extract_strided_slice %153 {offsets = [0, 24], sizes = [8, 8], strides = [1, 1]} : vector<8x96xf32> to vector<8x8xf32>
    %158 = vector.shape_cast %154 : vector<8x8xf32> to vector<1x8x8xf32>
    %159 = vector.shape_cast %155 : vector<8x8xf32> to vector<1x8x8xf32>
    %160 = vector.shape_cast %156 : vector<8x8xf32> to vector<1x8x8xf32>
    %161 = vector.shape_cast %157 : vector<8x8xf32> to vector<1x8x8xf32>
    %162 = tpu.concatenate %158, %159, %160, %161 in 0 : vector<1x8x8xf32>, vector<1x8x8xf32>, vector<1x8x8xf32>, vector<1x8x8xf32> -> vector<4x8x8xf32>
    %163 = vector.extract_strided_slice %153 {offsets = [0, 32], sizes = [8, 8], strides = [1, 1]} : vector<8x96xf32> to vector<8x8xf32>
    %164 = vector.extract_strided_slice %153 {offsets = [0, 40], sizes = [8, 8], strides = [1, 1]} : vector<8x96xf32> to vector<8x8xf32>
    %165 = vector.extract_strided_slice %153 {offsets = [0, 48], sizes = [8, 8], strides = [1, 1]} : vector<8x96xf32> to vector<8x8xf32>
    %166 = vector.extract_strided_slice %153 {offsets = [0, 56], sizes = [8, 8], strides = [1, 1]} : vector<8x96xf32> to vector<8x8xf32>
    %167 = vector.shape_cast %163 : vector<8x8xf32> to vector<1x8x8xf32>
    %168 = vector.shape_cast %164 : vector<8x8xf32> to vector<1x8x8xf32>
    %169 = vector.shape_cast %165 : vector<8x8xf32> to vector<1x8x8xf32>
    %170 = vector.shape_cast %166 : vector<8x8xf32> to vector<1x8x8xf32>
    %171 = tpu.concatenate %167, %168, %169, %170 in 0 : vector<1x8x8xf32>, vector<1x8x8xf32>, vector<1x8x8xf32>, vector<1x8x8xf32> -> vector<4x8x8xf32>
    %172 = vector.extract_strided_slice %153 {offsets = [0, 64], sizes = [8, 8], strides = [1, 1]} : vector<8x96xf32> to vector<8x8xf32>
    %173 = vector.extract_strided_slice %153 {offsets = [0, 72], sizes = [8, 8], strides = [1, 1]} : vector<8x96xf32> to vector<8x8xf32>
    %174 = vector.extract_strided_slice %153 {offsets = [0, 80], sizes = [8, 8], strides = [1, 1]} : vector<8x96xf32> to vector<8x8xf32>
    %175 = vector.extract_strided_slice %153 {offsets = [0, 88], sizes = [8, 8], strides = [1, 1]} : vector<8x96xf32> to vector<8x8xf32>
    %176 = vector.shape_cast %172 : vector<8x8xf32> to vector<1x8x8xf32>
    %177 = vector.shape_cast %173 : vector<8x8xf32> to vector<1x8x8xf32>
    %178 = vector.shape_cast %174 : vector<8x8xf32> to vector<1x8x8xf32>
    %179 = vector.shape_cast %175 : vector<8x8xf32> to vector<1x8x8xf32>
    %180 = tpu.concatenate %176, %177, %178, %179 in 0 : vector<1x8x8xf32>, vector<1x8x8xf32>, vector<1x8x8xf32>, vector<1x8x8xf32> -> vector<4x8x8xf32>
    "tpu.trace_start"() <{level = 10 : i32, message = "hqd,hkd->hqk"}> : () -> ()
    %cst_70 = arith.constant dense<0.000000e+00> : vector<4x8x8xf32>
    %181 = tpu.matmul %162, %171, %cst_70 {dimension_numbers = #tpu.dot_dimension_numbers<[2], [2], [1], [1], [0, 0, 0, 1, 1, 1], [0], [0]>} : vector<4x8x8xf32>, vector<4x8x8xf32>, vector<4x8x8xf32> -> vector<4x8x8xf32>
    "tpu.trace_stop"() : () -> ()
    %cst_71 = arith.constant dense<0xFF800000> : vector<4x8xf32>
    %182 = vector.multi_reduction <maximumf>, %181, %cst_71 [2] : vector<4x8x8xf32> to vector<4x8xf32>
    %183 = vector.shape_cast %182 : vector<4x8xf32> to vector<4x8x1xf32>
    %184 = vector.broadcast %183 : vector<4x8x1xf32> to vector<4x8x8xf32>
    %185 = arith.subf %181, %184 : vector<4x8x8xf32>
    %186 = math.exp %185 : vector<4x8x8xf32>
    %cst_72 = arith.constant dense<0.000000e+00> : vector<4x8xf32>
    %187 = vector.multi_reduction <add>, %186, %cst_72 [2] : vector<4x8x8xf32> to vector<4x8xf32>
    %188 = vector.shape_cast %187 : vector<4x8xf32> to vector<4x8x1xf32>
    %189 = vector.broadcast %188 : vector<4x8x1xf32> to vector<4x8x8xf32>
    %190 = arith.divf %186, %189 : vector<4x8x8xf32>
    "tpu.trace_start"() <{level = 10 : i32, message = "hqk,hkd->hqd"}> : () -> ()
    %cst_73 = arith.constant dense<0.000000e+00> : vector<4x8x8xf32>
    %191 = tpu.matmul %190, %180, %cst_73 {dimension_numbers = #tpu.dot_dimension_numbers<[2], [1], [1], [2], [0, 0, 0, 1, 1, 2], [0], [0]>} : vector<4x8x8xf32>, vector<4x8x8xf32>, vector<4x8x8xf32> -> vector<4x8x8xf32>
    "tpu.trace_stop"() : () -> ()
    %192 = vector.extract_strided_slice %191 {offsets = [0, 0, 0], sizes = [1, 8, 8], strides = [1, 1, 1]} : vector<4x8x8xf32> to vector<1x8x8xf32>
    %193 = vector.shape_cast %192 : vector<1x8x8xf32> to vector<8x8xf32>
    %194 = vector.extract_strided_slice %191 {offsets = [1, 0, 0], sizes = [1, 8, 8], strides = [1, 1, 1]} : vector<4x8x8xf32> to vector<1x8x8xf32>
    %195 = vector.shape_cast %194 : vector<1x8x8xf32> to vector<8x8xf32>
    %196 = vector.extract_strided_slice %191 {offsets = [2, 0, 0], sizes = [1, 8, 8], strides = [1, 1, 1]} : vector<4x8x8xf32> to vector<1x8x8xf32>
    %197 = vector.shape_cast %196 : vector<1x8x8xf32> to vector<8x8xf32>
    %198 = vector.extract_strided_slice %191 {offsets = [3, 0, 0], sizes = [1, 8, 8], strides = [1, 1, 1]} : vector<4x8x8xf32> to vector<1x8x8xf32>
    %199 = vector.shape_cast %198 : vector<1x8x8xf32> to vector<8x8xf32>
    %200 = tpu.concatenate %193, %195, %197, %199 in 1 : vector<8x8xf32>, vector<8x8xf32>, vector<8x8xf32>, vector<8x8xf32> -> vector<8x32xf32>
    %201 = arith.truncf %200 : vector<8x32xf32> to vector<8x32xbf16>
    %c1_74 = arith.constant 1 : index
    %c0_75 = arith.constant 0 : index
    %c0_76 = arith.constant 0 : index
    %202 = vector.load %arg7[%c1_74, %c0_75, %c0_76] : memref<2x32x32xbf16, #tpu.memory_space<vmem>>, vector<1x32x32xbf16>
    %203 = vector.shape_cast %202 : vector<1x32x32xbf16> to vector<32x32xbf16>
    %cst_77 = arith.constant dense<0.000000e+00> : vector<8x32xf32>
    %204 = tpu.matmul %201, %203, %cst_77 {dimension_numbers = #tpu.dot_dimension_numbers<[1], [0], [0], [1], [0, 0, 1, 1], [], []>} : vector<8x32xbf16>, vector<32x32xbf16>, vector<8x32xf32> -> vector<8x32xf32>
    %c1_78 = arith.constant 1 : index
    %c0_79 = arith.constant 0 : index
    %c0_80 = arith.constant 0 : index
    %205 = vector.load %arg8[%c1_78, %c0_79, %c0_80] : memref<2x1x32xf32, #tpu.memory_space<vmem>>, vector<1x1x32xf32>
    %206 = vector.shape_cast %205 : vector<1x1x32xf32> to vector<1x32xf32>
    %207 = vector.broadcast %206 : vector<1x32xf32> to vector<8x32xf32>
    %208 = arith.addf %204, %207 : vector<8x32xf32>
    %209 = arith.addf %145, %208 : vector<8x32xf32>
    %cst_81 = arith.constant dense<0.000000e+00> : vector<8xf32>
    %210 = vector.multi_reduction <add>, %209, %cst_81 [1] : vector<8x32xf32> to vector<8xf32>
    %211 = vector.shape_cast %210 : vector<8xf32> to vector<8x1xf32>
    %cst_82 = arith.constant 3.200000e+01 : f32
    %212 = vector.broadcast %cst_82 : f32 to vector<8x1xf32>
    %213 = arith.divf %211, %212 : vector<8x1xf32>
    %214 = vector.broadcast %213 : vector<8x1xf32> to vector<8x32xf32>
    %215 = arith.subf %209, %214 : vector<8x32xf32>
    %216 = arith.mulf %215, %215 : vector<8x32xf32>
    %cst_83 = arith.constant dense<0.000000e+00> : vector<8xf32>
    %217 = vector.multi_reduction <add>, %216, %cst_83 [1] : vector<8x32xf32> to vector<8xf32>
    %218 = vector.shape_cast %217 : vector<8xf32> to vector<8x1xf32>
    %cst_84 = arith.constant 3.200000e+01 : f32
    %219 = vector.broadcast %cst_84 : f32 to vector<8x1xf32>
    %220 = arith.divf %218, %219 : vector<8x1xf32>
    %221 = vector.broadcast %213 : vector<8x1xf32> to vector<8x32xf32>
    %222 = arith.subf %209, %221 : vector<8x32xf32>
    %cst_85 = arith.constant 9.99999974E-6 : f32
    %223 = vector.broadcast %cst_85 : f32 to vector<8x1xf32>
    %224 = arith.addf %220, %223 : vector<8x1xf32>
    %225 = math.rsqrt %224 : vector<8x1xf32>
    %226 = vector.broadcast %225 : vector<8x1xf32> to vector<8x32xf32>
    %227 = arith.mulf %222, %226 : vector<8x32xf32>
    %c1_86 = arith.constant 1 : index
    %c0_87 = arith.constant 0 : index
    %c0_88 = arith.constant 0 : index
    %228 = vector.load %arg9[%c1_86, %c0_87, %c0_88] : memref<2x1x32xf32, #tpu.memory_space<vmem>>, vector<1x1x32xf32>
    %229 = vector.shape_cast %228 : vector<1x1x32xf32> to vector<1x32xf32>
    %230 = vector.broadcast %229 : vector<1x32xf32> to vector<8x32xf32>
    %231 = arith.mulf %227, %230 : vector<8x32xf32>
    %c1_89 = arith.constant 1 : index
    %c0_90 = arith.constant 0 : index
    %c0_91 = arith.constant 0 : index
    %232 = vector.load %arg10[%c1_89, %c0_90, %c0_91] : memref<2x1x32xf32, #tpu.memory_space<vmem>>, vector<1x1x32xf32>
    %233 = vector.shape_cast %232 : vector<1x1x32xf32> to vector<1x32xf32>
    %234 = vector.broadcast %233 : vector<1x32xf32> to vector<8x32xf32>
    %235 = arith.addf %231, %234 : vector<8x32xf32>
    %236 = arith.truncf %235 : vector<8x32xf32> to vector<8x32xbf16>
    %c1_92 = arith.constant 1 : index
    %c0_93 = arith.constant 0 : index
    %c0_94 = arith.constant 0 : index
    %237 = vector.load %arg11[%c1_92, %c0_93, %c0_94] : memref<2x32x64xbf16, #tpu.memory_space<vmem>>, vector<1x32x64xbf16>
    %238 = vector.shape_cast %237 : vector<1x32x64xbf16> to vector<32x64xbf16>
    %cst_95 = arith.constant dense<0.000000e+00> : vector<8x64xf32>
    %239 = tpu.matmul %236, %238, %cst_95 {dimension_numbers = #tpu.dot_dimension_numbers<[1], [0], [0], [1], [0, 0, 1, 1], [], []>} : vector<8x32xbf16>, vector<32x64xbf16>, vector<8x64xf32> -> vector<8x64xf32>
    %c1_96 = arith.constant 1 : index
    %c0_97 = arith.constant 0 : index
    %c0_98 = arith.constant 0 : index
    %240 = vector.load %arg12[%c1_96, %c0_97, %c0_98] : memref<2x1x64xf32, #tpu.memory_space<vmem>>, vector<1x1x64xf32>
    %241 = vector.shape_cast %240 : vector<1x1x64xf32> to vector<1x64xf32>
    %242 = vector.broadcast %241 : vector<1x64xf32> to vector<8x64xf32>
    %243 = arith.addf %239, %242 : vector<8x64xf32>
    %cst_99 = arith.constant 0.000000e+00 : f32
    %244 = vector.broadcast %cst_99 : f32 to vector<8x64xf32>
    %245 = arith.maximumf %243, %244 : vector<8x64xf32>
    %246 = arith.truncf %245 : vector<8x64xf32> to vector<8x64xbf16>
    %c1_100 = arith.constant 1 : index
    %c0_101 = arith.constant 0 : index
    %c0_102 = arith.constant 0 : index
    %247 = vector.load %arg13[%c1_100, %c0_101, %c0_102] : memref<2x64x32xbf16, #tpu.memory_space<vmem>>, vector<1x64x32xbf16>
    %248 = vector.shape_cast %247 : vector<1x64x32xbf16> to vector<64x32xbf16>
    %cst_103 = arith.constant dense<0.000000e+00> : vector<8x32xf32>
    %249 = tpu.matmul %246, %248, %cst_103 {dimension_numbers = #tpu.dot_dimension_numbers<[1], [0], [0], [1], [0, 0, 1, 1], [], []>} : vector<8x64xbf16>, vector<64x32xbf16>, vector<8x32xf32> -> vector<8x32xf32>
    %c1_104 = arith.constant 1 : index
    %c0_105 = arith.constant 0 : index
    %c0_106 = arith.constant 0 : index
    %250 = vector.load %arg14[%c1_104, %c0_105, %c0_106] : memref<2x1x32xf32, #tpu.memory_space<vmem>>, vector<1x1x32xf32>
    %251 = vector.shape_cast %250 : vector<1x1x32xf32> to vector<1x32xf32>
    %252 = vector.broadcast %251 : vector<1x32xf32> to vector<8x32xf32>
    %253 = arith.addf %249, %252 : vector<8x32xf32>
    %254 = arith.addf %235, %253 : vector<8x32xf32>
    %cst_107 = arith.constant dense<0.000000e+00> : vector<8xf32>
    %255 = vector.multi_reduction <add>, %254, %cst_107 [1] : vector<8x32xf32> to vector<8xf32>
    %256 = vector.shape_cast %255 : vector<8xf32> to vector<8x1xf32>
    %cst_108 = arith.constant 3.200000e+01 : f32
    %257 = vector.broadcast %cst_108 : f32 to vector<8x1xf32>
    %258 = arith.divf %256, %257 : vector<8x1xf32>
    %259 = vector.broadcast %258 : vector<8x1xf32> to vector<8x32xf32>
    %260 = arith.subf %254, %259 : vector<8x32xf32>
    %261 = arith.mulf %260, %260 : vector<8x32xf32>
    %cst_109 = arith.constant dense<0.000000e+00> : vector<8xf32>
    %262 = vector.multi_reduction <add>, %261, %cst_109 [1] : vector<8x32xf32> to vector<8xf32>
    %263 = vector.shape_cast %262 : vector<8xf32> to vector<8x1xf32>
    %cst_110 = arith.constant 3.200000e+01 : f32
    %264 = vector.broadcast %cst_110 : f32 to vector<8x1xf32>
    %265 = arith.divf %263, %264 : vector<8x1xf32>
    %266 = vector.broadcast %258 : vector<8x1xf32> to vector<8x32xf32>
    %267 = arith.subf %254, %266 : vector<8x32xf32>
    %cst_111 = arith.constant 9.99999974E-6 : f32
    %268 = vector.broadcast %cst_111 : f32 to vector<8x1xf32>
    %269 = arith.addf %265, %268 : vector<8x1xf32>
    %270 = math.rsqrt %269 : vector<8x1xf32>
    %271 = vector.broadcast %270 : vector<8x1xf32> to vector<8x32xf32>
    %272 = arith.mulf %267, %271 : vector<8x32xf32>
    %c1_112 = arith.constant 1 : index
    %c0_113 = arith.constant 0 : index
    %c0_114 = arith.constant 0 : index
    %273 = vector.load %arg15[%c1_112, %c0_113, %c0_114] : memref<2x1x32xf32, #tpu.memory_space<vmem>>, vector<1x1x32xf32>
    %274 = vector.shape_cast %273 : vector<1x1x32xf32> to vector<1x32xf32>
    %275 = vector.broadcast %274 : vector<1x32xf32> to vector<8x32xf32>
    %276 = arith.mulf %272, %275 : vector<8x32xf32>
    %c1_115 = arith.constant 1 : index
    %c0_116 = arith.constant 0 : index
    %c0_117 = arith.constant 0 : index
    %277 = vector.load %arg16[%c1_115, %c0_116, %c0_117] : memref<2x1x32xf32, #tpu.memory_space<vmem>>, vector<1x1x32xf32>
    %278 = vector.shape_cast %277 : vector<1x1x32xf32> to vector<1x32xf32>
    %279 = vector.broadcast %278 : vector<1x32xf32> to vector<8x32xf32>
    %280 = arith.addf %276, %279 : vector<8x32xf32>
    %c0_118 = arith.constant 0 : index
    %c0_119 = arith.constant 0 : index
    %c0_120 = arith.constant 0 : index
    %281 = vector.load %arg17[%c0_118, %c0_119, %c0_120] : memref<1x8x32xf32, #tpu.memory_space<vmem>>, vector<1x8x32xf32>
    %282 = vector.shape_cast %281 : vector<1x8x32xf32> to vector<8x32xf32>
    %283 = vector.shape_cast %280 : vector<8x32xf32> to vector<1x8x32xf32>
    tpu.vector_store %arg17[%c0_118, %c0_119, %c0_120], %283 {strides = array<i32>} : memref<1x8x32xf32, #tpu.memory_space<vmem>>, vector<1x8x32xf32>,
    return
  }
  func.func @transform_0(%arg0: i32) -> (i32, i32, i32) {
    %c0_i32 = arith.constant 0 : i32
    %c0_i32_0 = arith.constant 0 : i32
    %c0_i32_1 = arith.constant 0 : i32
    return %arg0, %c0_i32, %c0_i32_0 : i32, i32, i32
  }
  func.func @transform_1(%arg0: i32) -> (i32, i32) {
    %c0_i32 = arith.constant 0 : i32
    %c0_i32_0 = arith.constant 0 : i32
    %c0_i32_1 = arith.constant 0 : i32
    return %c0_i32, %c0_i32_0 : i32, i32
  }
  func.func @transform_2(%arg0: i32) -> (i32, i32) {
    %c0_i32 = arith.constant 0 : i32
    %c0_i32_0 = arith.constant 0 : i32
    %c0_i32_1 = arith.constant 0 : i32
    return %c0_i32, %c0_i32_0 : i32, i32
  }
  func.func @transform_3(%arg0: i32) -> (i32, i32) {
    %c0_i32 = arith.constant 0 : i32
    %c0_i32_0 = arith.constant 0 : i32
    %c0_i32_1 = arith.constant 0 : i32
    return %c0_i32, %c0_i32_0 : i32, i32
  }
  func.func @transform_4(%arg0: i32) -> (i32, i32, i32) {
    %c0_i32 = arith.constant 0 : i32
    %c0_i32_0 = arith.constant 0 : i32
    %c0_i32_1 = arith.constant 0 : i32
    %c0_i32_2 = arith.constant 0 : i32
    return %c0_i32, %c0_i32_0, %c0_i32_1 : i32, i32, i32
  }
  func.func @transform_5(%arg0: i32) -> (i32, i32, i32) {
    %c0_i32 = arith.constant 0 : i32
    %c0_i32_0 = arith.constant 0 : i32
    %c0_i32_1 = arith.constant 0 : i32
    %c0_i32_2 = arith.constant 0 : i32
    return %c0_i32, %c0_i32_0, %c0_i32_1 : i32, i32, i32
  }
  func.func @transform_6(%arg0: i32) -> (i32, i32, i32) {
    %c0_i32 = arith.constant 0 : i32
    %c0_i32_0 = arith.constant 0 : i32
    %c0_i32_1 = arith.constant 0 : i32
    %c0_i32_2 = arith.constant 0 : i32
    return %c0_i32, %c0_i32_0, %c0_i32_1 : i32, i32, i32
  }
  func.func @transform_7(%arg0: i32) -> (i32, i32, i32) {
    %c0_i32 = arith.constant 0 : i32
    %c0_i32_0 = arith.constant 0 : i32
    %c0_i32_1 = arith.constant 0 : i32
    %c0_i32_2 = arith.constant 0 : i32
    return %c0_i32, %c0_i32_0, %c0_i32_1 : i32, i32, i32
  }
  func.func @transform_8(%arg0: i32) -> (i32, i32, i32) {
    %c0_i32 = arith.constant 0 : i32
    %c0_i32_0 = arith.constant 0 : i32
    %c0_i32_1 = arith.constant 0 : i32
    %c0_i32_2 = arith.constant 0 : i32
    return %c0_i32, %c0_i32_0, %c0_i32_1 : i32, i32, i32
  }
  func.func @transform_9(%arg0: i32) -> (i32, i32, i32) {
    %c0_i32 = arith.constant 0 : i32
    %c0_i32_0 = arith.constant 0 : i32
    %c0_i32_1 = arith.constant 0 : i32
    %c0_i32_2 = arith.constant 0 : i32
    return %c0_i32, %c0_i32_0, %c0_i32_1 : i32, i32, i32
  }
  func.func @transform_10(%arg0: i32) -> (i32, i32, i32) {
    %c0_i32 = arith.constant 0 : i32
    %c0_i32_0 = arith.constant 0 : i32
    %c0_i32_1 = arith.constant 0 : i32
    %c0_i32_2 = arith.constant 0 : i32
    return %c0_i32, %c0_i32_0, %c0_i32_1 : i32, i32, i32
  }
  func.func @transform_11(%arg0: i32) -> (i32, i32, i32) {
    %c0_i32 = arith.constant 0 : i32
    %c0_i32_0 = arith.constant 0 : i32
    %c0_i32_1 = arith.constant 0 : i32
    %c0_i32_2 = arith.constant 0 : i32
    return %c0_i32, %c0_i32_0, %c0_i32_1 : i32, i32, i32
  }
  func.func @transform_12(%arg0: i32) -> (i32, i32, i32) {
    %c0_i32 = arith.constant 0 : i32
    %c0_i32_0 = arith.constant 0 : i32
    %c0_i32_1 = arith.constant 0 : i32
    %c0_i32_2 = arith.constant 0 : i32
    return %c0_i32, %c0_i32_0, %c0_i32_1 : i32, i32, i32
  }
  func.func @transform_13(%arg0: i32) -> (i32, i32, i32) {
    %c0_i32 = arith.constant 0 : i32
    %c0_i32_0 = arith.constant 0 : i32
    %c0_i32_1 = arith.constant 0 : i32
    %c0_i32_2 = arith.constant 0 : i32
    return %c0_i32, %c0_i32_0, %c0_i32_1 : i32, i32, i32
  }
  func.func @transform_14(%arg0: i32) -> (i32, i32, i32) {
    %c0_i32 = arith.constant 0 : i32
    %c0_i32_0 = arith.constant 0 : i32
    %c0_i32_1 = arith.constant 0 : i32
    %c0_i32_2 = arith.constant 0 : i32
    return %c0_i32, %c0_i32_0, %c0_i32_1 : i32, i32, i32
  }
  func.func @transform_15(%arg0: i32) -> (i32, i32, i32) {
    %c0_i32 = arith.constant 0 : i32
    %c0_i32_0 = arith.constant 0 : i32
    %c0_i32_1 = arith.constant 0 : i32
    %c0_i32_2 = arith.constant 0 : i32
    return %c0_i32, %c0_i32_0, %c0_i32_1 : i32, i32, i32
  }
  func.func @transform_16(%arg0: i32) -> (i32, i32, i32) {
    %c0_i32 = arith.constant 0 : i32
    %c0_i32_0 = arith.constant 0 : i32
    %c0_i32_1 = arith.constant 0 : i32
    return %arg0, %c0_i32, %c0_i32_0 : i32, i32, i32
  }
}

</mosaic_0001>

<bundles_post_ra>
// kernel: tpu_custom_call.1
= control target key start
LH: loop header
LB: loop body
LE: loop exit
PB: predicated region body
PF: predicated region fallthrough
CT: control target
= control target key end

     0   :  { %s4704_s0 = inlined_call_operand.vmem [shape: bf16[2,1024,32], index: 0, kind: input, shape index: {}]   ;;  %s4705_s1 = inlined_call_operand.vmem [shape: bf16[8,1024], index: 1, kind: input, shape index: {}]   ;;  %s4706_s2 = inlined_call_operand.vmem [shape: f32[8,1], index: 2, kind: input, shape index: {}]   ;;  %s4707_s3 = inlined_call_operand.vmem [shape: f32[8,32], index: 3, kind: input, shape index: {}]   ;;  %s4708_s4 = inlined_call_operand.vmem [shape: bf16[2,32,96], index: 4, kind: input, shape index: {}]   ;;  %s4709_s5 = inlined_call_operand.vmem [shape: f32[2,1,96], index: 5, kind: input, shape index: {}]   ;;  %s4710_s6 = inlined_call_operand.vmem [shape: bf16[2,32,32], index: 6, kind: input, shape index: {}]   ;;  %s4711_s7 = inlined_call_operand.vmem [shape: f32[2,1,32], index: 7, kind: input, shape index: {}]   ;;  %s4712_s8 = inlined_call_operand.vmem [shape: f32[2,1,32], index: 8, kind: input, shape index: {}]   ;;  %s4713_s9 = inlined_call_operand.vmem [shape: f32[2,1,32], index: 9, kind: input, shape index: {}]   ;;  %s4714_s10 = inlined_call_operand.vmem [shape: bf16[2,32,64], index: 10, kind: input, shape index: {}]   ;;  %s4715_s11 = inlined_call_operand.vmem [shape: f32[2,1,64], index: 11, kind: input, shape index: {}]   ;;  %s4716_s12 = inlined_call_operand.vmem [shape: bf16[2,64,32], index: 12, kind: input, shape index: {}]   ;;  %s4717_s13 = inlined_call_operand.vmem [shape: f32[2,1,32], index: 13, kind: input, shape index: {}]   ;;  %s4718_s14 = inlined_call_operand.vmem [shape: f32[2,1,32], index: 14, kind: input, shape index: {}]   ;;  %s4719_s15 = inlined_call_operand.vmem [shape: f32[2,1,32], index: 15, kind: input, shape index: {}]   ;;  %s4720_s16 = inlined_call_operand.hbm [shape: f32[2,8,32], index: 16, kind: output, shape index: {}]  }
   0x1   :  { %4732 = sst [smem:[#allocation7_spill]] %s4704_s0 }
   0x2   :  { %4733 = sst [smem:[#allocation8_spill]] %s4705_s1 }
   0x3   :  { %4734 = sst [smem:[#allocation9_spill]] %s4706_s2 }
   0x4   :  { %4735 = sst [smem:[#allocation10_spill]] %s4707_s3 }
   0x5   :  { %4736 = sst [smem:[#allocation11_spill]] %s4708_s4 }
   0x6   :  { %4737 = sst [smem:[#allocation12_spill]] %s4709_s5 }
   0x7   :  { %21 = vsyncpa [#allocation3], 0 }
   0x8   :  { %23 = vsyncpa [#allocation3 + $0x1], 0  ;;  %s4186_s21 = smov 0   ;;  %s4188_s22 = smov 0  }
   0x9   :  { %s4190_s23 = smov 0   ;;  %s4192_s24 = smov 0  }
   0xa LB: > { %4738 = sst [smem:[#allocation5_spill]] %s4083_s23  ;;  %s4207_s25 = sadd.s32 4294967295, %s4087_s24   ;;  %s4087_s24 = sphi %s4192_s24, %s4760_s24   ;;  %s4083_s23 = sphi %s4190_s23, %s4757_s23   ;;  %s4079_s22 = sphi %s4188_s22, %s4759_s22   ;;  %s4075_s21 = sphi %s4186_s21, %s4758_s21  }
   0xb   : > { %s3364_s26 = sadd.s32 4294967294, %s4087_s24   ;;  %s4211_s27 = sadd.s32 1, %s4087_s24  }
   0xc   : > { %s377_s28 = sadd.s32 1, %s4083_s23  ;;  %s374_s29 = ssub.s32 %s4087_s24, %s4211_s27 }
   0xd   : > { %p387_p0 = scmp.ne.s32.totalorder %s4083_s23, %s4079_s22  ;;  %p375_p1 = scmp.eq.s32.totalorder %s374_s29, 0 }
   0xe   : > { %p388_p2 = scmp.eq.s32.totalorder %s4207_s25, 1  ;;  %p393_p3 = scmp.ne.s32.totalorder %s4079_s22, %s4075_s21 }
   0xf   : > { %p394_p4 = scmp.eq.s32.totalorder %s3364_s26, 1  ;;  %p3367_p7 = scmp.ge.s32.totalorder %s4087_s24, 1 }
  0x10   : > { %s4222_s30 = scalar_select %p375_p1, %s4083_s23, %s377_s28  }
  0x11   : > { %p4224_p5 = por %p388_p2, %p387_p0  ;;  %p4228_p6 = por %p394_p4, %p393_p3 }
  0x12   : > { %4739 = sst [smem:[#allocation6_spill]] %s4222_s30  ;;  %p465_p8 = scmp.lt.s32.totalorder %s4087_s24, 3 }
  0x14   : > { %p466_p9 = pnand %p3367_p7, %p465_p8 }
  0x15   : > { %p515_p10 = scmp.lt.s32.totalorder (!%p466_p9), %s4207_s25, 1  ;;  %s4742_s1 = sld [smem:[#allocation8_spill]] (!%p466_p9) }
  0x16   : > { %469 = sbr.rel (%p466_p9) target bundleno = 5239 (0x1477), region = 84  ;;  %s4743_s2 = sld [smem:[#allocation9_spill]] (!%p466_p9) }
  0x17   : > { %s4744_s30 = sld [smem:[#allocation7_spill]] (!%p466_p9)  ;;  %s4730_s20 = smov (!%p466_p9), 120  }
  0x18   : > { %s4745_s4 = sld [smem:[#allocation11_spill]] (!%p466_p9)  ;;  %s4724_s26 = smov (!%p466_p9), 96  }
  0x19   : > { %s4746_s3 = sld [smem:[#allocation10_spill]] (!%p466_p9)  ;;  %s4727_s28 = smov (!%p466_p9), 24  }
  0x1a   : > { %s4747_s5 = sld [smem:[#allocation12_spill]] (!%p466_p9)  ;;  %s4749_s29 = smov (!%p466_p9), 120  }
  0x1b   : > { %v4238_v0 = vld [vmem:[%s4742_s1] sm:$0xff]  ;;  %v4243_v1 = vld [vmem:[%s4742_s1 + $0x8] sm:$0xff]  ;;  %v4089_v4 = vmov 0   ;;  %s516_s18 = scalar_select %p515_p10, %s4207_s25, 1  ;;  %v4290_v35 = vld [vmem:[%s4742_s1 + $0x10] sm:$0xff]  ;;  %vm4091_vm0 = vmmov 0  }
  0x1c   : > { %v3372_v2 = vcombine.high %v4238_v0, %v4238_v0  ;;  %v3374_v3 = vcombine.high %v4243_v1, %v4243_v1  ;;  %3894 = vset.pattern.permute.xlu0 %v4089_v4  ;;  %v653_v5 = vld [vmem:[%s4743_s2] sm:$0xff]  ;;  %v4296_v37 = vld [vmem:[%s4742_s1 + $0x18] sm:$0xff]  ;;  %v3371_v40 = vcombine.low %v4238_v0, %v4238_v0  ;;  %v3373_v41 = vcombine.low %v4243_v1, %v4243_v1 }
  0x1d   : > { %656 = vperm.xlu0 %3894, %v653_v5   ;;  %s3543_s19 = sshll.u32 %s516_s18, 9  ;;  %v3376_v44 = vcombine.high %v4290_v35, %v4290_v35  ;;  %v3378_v46 = vcombine.high %v4296_v37, %v4296_v37  ;;  %vm1258_vm1 = vcmask 261120   ;;  %vm1311_vm2 = vcmask 64512   ;;  %s4751_s18 = smov 96  }
  0x1e   : > { %1103 = vmatprep.mubr.bf16.mxu0 %v3372_v2  ;;  %1143 = vmatprep.mubr.bf16.mxu1 %v3374_v3  ;;  %s4256_s23 = scalar_lea.vmem %s4744_s30, %s3543_s19  ;;  %s4731_s19 = smov 112   ;;  %vm1975_vm3 = vcmask 130048   ;;  %vm1977_vm4 = vcmask 195584   ;;  %vm2185_vm5 = vcmask 523264  }
  0x1f   : > { %v3895_v6 = vld [vmem:[%s4256_s23 + $0x78] sm:$0xff]   ;;  %v3899_v10 = vld [vmem:[%s4256_s23 + $0x70] sm:$0xff]   ;;  %v3903_v14 = vld [vmem:[%s4256_s23 + $0x68] sm:$0xff]   ;;  %s4722_s30 = smov 64  }
  0x20   : > { %v3896_v7 = vld [vmem:[%s4256_s23 + $0xf8] sm:$0xff]   ;;  %3544 = vmatprep.subr.bf16.mxu0 %v3895_v6  ;;  %v3900_v11 = vld [vmem:[%s4256_s23 + $0xf0] sm:$0xff]   ;;  %v3904_v15 = vld [vmem:[%s4256_s23 + $0xe8] sm:$0xff]  }
  0x21   : > { %v3897_v8 = vld [vmem:[%s4256_s23 + $0x38] sm:$0xff]   ;;  %3566 = vmatprep.subr.bf16.mxu1 %v3896_v7  ;;  %v3901_v12 = vld [vmem:[%s4256_s23 + $0x30] sm:$0xff]   ;;  %v3905_v16 = vld [vmem:[%s4256_s23 + $0x28] sm:$0xff]  }
  0x22   : > { %v3898_v9 = vld [vmem:[%s4256_s23 + $0xb8] sm:$0xff]   ;;  %3545 = vmatpush3.bf16.msra.mxu0 %v3897_v8  ;;  %v3902_v13 = vld [vmem:[%s4256_s23 + $0xb0] sm:$0xff]   ;;  %v3906_v17 = vld [vmem:[%s4256_s23 + $0xa8] sm:$0xff]  }
  0x23   : > { %3567 = vmatpush3.bf16.msra.mxu1 %v3898_v9  ;;  %3546 = vmatprep.subr.bf16.mxu0 %v3899_v10  ;;  %v3907_v18 = vld [vmem:[%s4256_s23 + $0x60] sm:$0xff]   ;;  %v3911_v22 = vld [vmem:[%s4256_s23 + $0x58] sm:$0xff]   ;;  %v3915_v26 = vld [vmem:[%s4256_s23 + $0x50] sm:$0xff]  }
  0x24   : > { %3568 = vmatprep.subr.bf16.mxu1 %v3900_v11  ;;  %v3908_v19 = vld [vmem:[%s4256_s23 + $0xe0] sm:$0xff]   ;;  %v3912_v23 = vld [vmem:[%s4256_s23 + $0xd8] sm:$0xff]   ;;  %v3916_v27 = vld [vmem:[%s4256_s23 + $0xd0] sm:$0xff]  }
  0x25   : > { %v3909_v20 = vld [vmem:[%s4256_s23 + $0x20] sm:$0xff]   ;;  %v3913_v24 = vld [vmem:[%s4256_s23 + $0x18] sm:$0xff]   ;;  %v3917_v28 = vld [vmem:[%s4256_s23 + $0x10] sm:$0xff]  }
  0x26   : > { %3547 = vmatpush3.bf16.msra.mxu0 %v3901_v12  ;;  %v3910_v21 = vld [vmem:[%s4256_s23 + $0xa0] sm:$0xff]   ;;  %v3914_v25 = vld [vmem:[%s4256_s23 + $0x98] sm:$0xff]   ;;  %v3918_v29 = vld [vmem:[%s4256_s23 + $0x90] sm:$0xff]   ;;  %v3375_v12 = vcombine.low %v4290_v35, %v4290_v35 }
  0x27   : > { %3569 = vmatpush3.bf16.msra.mxu1 %v3902_v13  ;;  %3548 = vmatprep.subr.bf16.mxu0 %v3903_v14  ;;  %v3919_v30 = vld [vmem:[%s4256_s23 + $0x48] sm:$0xff]   ;;  %v3923_v34 = vld [vmem:[%s4256_s23 + $0x40] sm:$0xff]   ;;  %v3931_v42 = vld [vmem:[%s4256_s23 + $0x178] sm:$0xff]   ;;  %v3377_v13 = vcombine.low %v4296_v37, %v4296_v37 }
  0x28   : > { %3570 = vmatprep.subr.bf16.mxu1 %v3904_v15  ;;  %v3920_v31 = vld [vmem:[%s4256_s23 + $0xc8] sm:$0xff]   ;;  %v3924_v36 = vld [vmem:[%s4256_s23 + $0xc0] sm:$0xff]   ;;  %v3932_v43 = vld [vmem:[%s4256_s23 + $0x1f8] sm:$0xff]   ;;  %v4090_v15 = vmov 0.0  }
  0x29   : > { %v3921_v32 = vld [vmem:[%s4256_s23 + $0x8] sm:$0xff]   ;;  %v3925_v38 = vld [vmem:[%s4256_s23] sm:$0xff]   ;;  %v3933_v45 = vld [vmem:[%s4256_s23 + $0x138] sm:$0xff]  }
  0x2a   : > { %3549 = vmatpush3.bf16.msra.mxu0 %v3905_v16  ;;  %v3922_v33 = vld [vmem:[%s4256_s23 + $0x88] sm:$0xff]   ;;  %v3926_v39 = vld [vmem:[%s4256_s23 + $0x80] sm:$0xff]   ;;  %v3934_v47 = vld [vmem:[%s4256_s23 + $0x1b8] sm:$0xff]  }
  0x2b   : > { %3571 = vmatpush3.bf16.msra.mxu1 %v3906_v17  ;;  %3550 = vmatprep.subr.bf16.mxu0 %v3907_v18  ;;  %v3935_v48 = vld [vmem:[%s4256_s23 + $0x170] sm:$0xff]   ;;  %v3939_v52 = vld [vmem:[%s4256_s23 + $0x168] sm:$0xff]   ;;  %v3943_v56 = vld [vmem:[%s4256_s23 + $0x160] sm:$0xff]  }
  0x2c   : > { %3572 = vmatprep.subr.bf16.mxu1 %v3908_v19  ;;  %v3936_v49 = vld [vmem:[%s4256_s23 + $0x1f0] sm:$0xff]   ;;  %v3940_v53 = vld [vmem:[%s4256_s23 + $0x1e8] sm:$0xff]   ;;  %v3944_v57 = vld [vmem:[%s4256_s23 + $0x1e0] sm:$0xff]  }
  0x2d   : > { %v3937_v50 = vld [vmem:[%s4256_s23 + $0x130] sm:$0xff]   ;;  %v3941_v54 = vld [vmem:[%s4256_s23 + $0x128] sm:$0xff]   ;;  %v3945_v58 = vld [vmem:[%s4256_s23 + $0x120] sm:$0xff]  }
  0x2e   : > { %3551 = vmatpush3.bf16.msra.mxu0 %v3909_v20  ;;  %v3938_v51 = vld [vmem:[%s4256_s23 + $0x1b0] sm:$0xff]   ;;  %v3942_v55 = vld [vmem:[%s4256_s23 + $0x1a8] sm:$0xff]   ;;  %v3946_v59 = vld [vmem:[%s4256_s23 + $0x1a0] sm:$0xff]  }
  0x2f   : > { %3573 = vmatpush3.bf16.msra.mxu1 %v3910_v21  ;;  %3552 = vmatprep.subr.bf16.mxu0 %v3911_v22  ;;  %v3947_v60 = vld [vmem:[%s4256_s23 + $0x158] sm:$0xff]   ;;  %v3951_v0 = vld [vmem:[%s4256_s23 + $0x150] sm:$0xff]   ;;  %v3955_v4 = vld [vmem:[%s4256_s23 + $0x148] sm:$0xff]  }
  0x30   : > { %3574 = vmatprep.subr.bf16.mxu1 %v3912_v23  ;;  %v3948_v61 = vld [vmem:[%s4256_s23 + $0x1d8] sm:$0xff]   ;;  %v3952_v1 = vld [vmem:[%s4256_s23 + $0x1d0] sm:$0xff]   ;;  %v3956_v5 = vld [vmem:[%s4256_s23 + $0x1c8] sm:$0xff]  }
  0x31   : > { %v3949_v62 = vld [vmem:[%s4256_s23 + $0x118] sm:$0xff]   ;;  %v3953_v2 = vld [vmem:[%s4256_s23 + $0x110] sm:$0xff]   ;;  %v3957_v6 = vld [vmem:[%s4256_s23 + $0x108] sm:$0xff]  }
  0x32   : > { %3553 = vmatpush3.bf16.msra.mxu0 %v3913_v24  ;;  %v3950_v63 = vld [vmem:[%s4256_s23 + $0x198] sm:$0xff]   ;;  %v3954_v3 = vld [vmem:[%s4256_s23 + $0x190] sm:$0xff]   ;;  %v3958_v7 = vld [vmem:[%s4256_s23 + $0x188] sm:$0xff]  }
  0x33   : > { %3575 = vmatpush3.bf16.msra.mxu1 %v3914_v25  ;;  %3554 = vmatprep.subr.bf16.mxu0 %v3915_v26  ;;  %v3959_v8 = vld [vmem:[%s4256_s23 + $0x140] sm:$0xff]   ;;  %v3967_v14 = vld [vmem:[%s4745_s4 + $0x8] sm:$0xff]  }
  0x34   : > { %3576 = vmatprep.subr.bf16.mxu1 %v3916_v27  ;;  %v3960_v9 = vld [vmem:[%s4256_s23 + $0x1c0] sm:$0xff]  }
  0x35   : > { %v3961_v10 = vld [vmem:[%s4256_s23 + $0x100] sm:$0xff]  }
  0x36   : > { %3555 = vmatpush3.bf16.msra.mxu0 %v3917_v28  ;;  %v3962_v11 = vld [vmem:[%s4256_s23 + $0x180] sm:$0xff]   ;;  %s4726_s23 = smov 104  }
  0x37   : > { %3577 = vmatpush3.bf16.msra.mxu1 %v3918_v29  ;;  %3556 = vmatprep.subr.bf16.mxu0 %v3919_v30  ;;  %v3968_v16 = vld [vmem:[%s4745_s4] sm:$0xff]  }
  0x38   : > { %3578 = vmatprep.subr.bf16.mxu1 %v3920_v31 }
  0x3a   : > { %3557 = vmatpush3.bf16.msra.mxu0 %v3921_v32 }
  0x3b   : > { %3579 = vmatpush3.bf16.msra.mxu1 %v3922_v33  ;;  %3558 = vmatprep.subr.bf16.mxu0 %v3923_v34 }
  0x3c   : > { %3580 = vmatprep.subr.bf16.mxu1 %v3924_v36 }
  0x3e   : > { %3559 = vmatpush3.bf16.msra.mxu0 %v3925_v38 }
  0x3f   : > { %3581 = vmatpush3.bf16.msra.mxu1 %v3926_v39  ;;  %3588 = vmatprep.subr.bf16.mxu0 %v3931_v42  ;;  %v1232_v42 = vld [vmem:[%s4746_s3] sm:$0xff] }
  0x40   : > { %3610 = vmatprep.subr.bf16.mxu1 %v3932_v43 }
  0x41   : > { %1104 = vmatmul.mubr.bf16.vlgmr.msra.gmra.mxu0 %v3371_v40 }
  0x42   : > { %1144 = vmatmul.mubr.bf16.vlgmr.msra.gmra.mxu1 %v3373_v41  ;;  %3589 = vmatpush3.bf16.msra.mxu0 %v3933_v45 }
  0x43   : > { %3611 = vmatpush3.bf16.msra.mxu1 %v3934_v47  ;;  %1183 = vmatprep.mubr.bf16.mxu0 %v3376_v44 }
  0x44   : > { %3590 = vmatprep.subr.bf16.mxu0 %v3935_v48  ;;  %1223 = vmatprep.mubr.bf16.mxu1 %v3378_v46  ;;  %v3443_v46 = vld [vmem:[%s4747_s5] ss:$0 sm:$0xff] }
  0x45   : > { %3612 = vmatprep.subr.bf16.mxu1 %v3936_v49 }
  0x46   : > { %3591 = vmatpush3.bf16.msra.mxu0 %v3937_v50 }
  0x47   : > { %3613 = vmatpush3.bf16.msra.mxu1 %v3938_v51  ;;  %3592 = vmatprep.subr.bf16.mxu0 %v3939_v52 }
  0x48   : > { %3614 = vmatprep.subr.bf16.mxu1 %v3940_v53 }
  0x4a   : > { %3593 = vmatpush3.bf16.msra.mxu0 %v3941_v54 }
  0x4b   : > { %3615 = vmatpush3.bf16.msra.mxu1 %v3942_v55  ;;  %3594 = vmatprep.subr.bf16.mxu0 %v3943_v56 }
  0x4c   : > { %3616 = vmatprep.subr.bf16.mxu1 %v3944_v57 }
  0x4e   : > { %3595 = vmatpush3.bf16.msra.mxu0 %v3945_v58 }
  0x4f   : > { %3617 = vmatpush3.bf16.msra.mxu1 %v3946_v59  ;;  %3596 = vmatprep.subr.bf16.mxu0 %v3947_v60 }
  0x50   : > { %3618 = vmatprep.subr.bf16.mxu1 %v3948_v61 }
  0x52   : > { %3597 = vmatpush3.bf16.msra.mxu0 %v3949_v62 }
  0x53   : > { %3619 = vmatpush3.bf16.msra.mxu1 %v3950_v63  ;;  %3598 = vmatprep.subr.bf16.mxu0 %v3951_v0 }
  0x54   : > { %3620 = vmatprep.subr.bf16.mxu1 %v3952_v1 }
  0x56   : > { %3599 = vmatpush3.bf16.msra.mxu0 %v3953_v2 }
  0x57   : > { %3621 = vmatpush3.bf16.msra.mxu1 %v3954_v3  ;;  %3600 = vmatprep.subr.bf16.mxu0 %v3955_v4 }
  0x58   : > { %3622 = vmatprep.subr.bf16.mxu1 %v3956_v5 }
  0x5a   : > { %3601 = vmatpush3.bf16.msra.mxu0 %v3957_v6 }
  0x5b   : > { %3623 = vmatpush3.bf16.msra.mxu1 %v3958_v7  ;;  %3602 = vmatprep.subr.bf16.mxu0 %v3959_v8 }
  0x5c   : > { %3624 = vmatprep.subr.bf16.mxu1 %v3960_v9 }
  0x5e   : > { %3603 = vmatpush3.bf16.msra.mxu0 %v3961_v10 }
  0x5f   : > { %3625 = vmatpush3.bf16.msra.mxu1 %v3962_v11  ;;  %3710 = vmatprep.subr.mxu0 %v4090_v15 }
  0x60   : > { %3692 = vmatprep.subr.bf16.mxu1 %v4090_v15 }
  0x61   : > { %1184 = vmatmul.mubr.bf16.vlgmr.msra.gmra.mxu0 %v3375_v12 }
  0x62   : > { %1224 = vmatmul.mubr.bf16.vlgmr.msra.gmra.mxu1 %v3377_v13  ;;  %3712 = vmatprep.mubr.msk.f32.mxu0 %vm4091_vm0, %v4090_v15 }
  0x63   : > { %3693 = vmatpush3.bf16.msra.mxu1 %v3967_v14  ;;  %3696 = vmatprep.mubr.msk.bf16.mxu1 %vm4091_vm0, %v4090_v15 }
  0x64   : > { %3694 = vmatprep.subr.bf16.mxu1 %v4090_v15 }
  0x67   : > { %3695 = vmatpush3.bf16.msra.mxu1 %v3968_v16 }
  0x68   : > { %3700 = vmatprep.subr.mxu1 %v4090_v15 }
  0x98   : > { %v657_v26 = vpop.permute.xlu0 %656 }
 0x101   : > { %v3560_v17 = vpop.f32.mrf.mxu0 }
 0x102   : > { %v3582_v18 = vpop.f32.mrf.mxu1 }
 0x103   : > { %v3561_v19 = vpop.f32.mrf.mxu0 }
 0x104   : > { %v3583_v20 = vpop.f32.mrf.mxu1  ;;  %v3562_v25 = vadd.f32 %v3561_v19, %v3560_v17 }
 0x105   : > { %v3563_v21 = vpop.f32.mrf.mxu0  ;;  %v3584_v27 = vadd.f32 %v3583_v20, %v3582_v18 }
 0x106   : > { %v3585_v22 = vpop.f32.mrf.mxu1  ;;  %v1106_v28 = vadd.f32 %v3562_v25, %v657_v26 }
 0x107   : > { %v3564_v23 = vpop.f32.mrf.mxu0 }
 0x108   : > { %v3586_v24 = vpop.f32.mrf.mxu1  ;;  %v1146_v32 = vadd.f32 %v3584_v27, %v1106_v28 }
 0x121   : > { %v3604_v29 = vpop.f32.mrf.mxu0 }
 0x122   : > { %v3626_v30 = vpop.f32.mrf.mxu1 }
 0x123   : > { %v3605_v31 = vpop.f32.mrf.mxu0 }
 0x124   : > { %v3606_v33 = vadd.f32 %v3605_v31, %v3604_v29  ;;  %v3627_v34 = vpop.f32.mrf.mxu1 }
 0x125   : > { %v3607_v35 = vpop.f32.mrf.mxu0  ;;  %v3628_v37 = vadd.f32 %v3627_v34, %v3626_v30 }
 0x126   : > { %v1186_v36 = vadd.f32 %v3606_v33, %v1146_v32  ;;  %v3629_v38 = vpop.f32.mrf.mxu1 }
 0x127   : > { %v3608_v39 = vpop.f32.mrf.mxu0 }
 0x128   : > { %v1226_v40 = vadd.f32 %v3628_v37, %v1186_v36  ;;  %v3630_v41 = vpop.f32.mrf.mxu1 }
 0x12a   : > { %v1231_v43 = vmul.f32 5.656854, %v1226_v40 }
 0x12c   : > { %v4361_v44 = vadd.f32 %v1232_v42, %v1231_v43 }
 0x12e   : > { %v1234_v45 = vpack.c.bf16 %v4361_v44, %v4361_v44 }
 0x130   : > { %3697 = vmatmul.mubr.msk.bf16.vlgmr.msra.gmra.mxu1 %vm1258_vm1, %v1234_v45 }
 0x131   : > { %3702 = vmatprep.mubr.msk.f32.mxu1 %vm4091_vm0, %v4090_v15 }
 0x1f0   : > { %v1296_v47 = vpop.f32.mrf.mxu1 }
 0x1f1   : > { %v1297_v48 = vadd.f32 %v3443_v46, %v1296_v47  ;;  %v3969_v47 = vld [vmem:[%s4710_s6 + $0x8] sm:$0xff]  }
 0x1f2   : > { %v3698_v49 = vpop.f32.mrf.mxu1 }
 0x1f3   : > { %1305 = vrot.lane.b32.xlu1 %v1297_v48, %s4731_s19  ;;  %1303 = vrot.lane.b32.xlu0 %v1297_v48, %s4730_s20 }
 0x1f4   : > { %v1299_v50 = vpop.f32.mrf.mxu1 }
 0x1f6   : > { %v3699_v51 = vpop.f32.mrf.mxu1 }
 0x1f7   : > { %1307 = vrot.lane.b32.xlu1 %v1297_v48, %s4726_s23  ;;  %1309 = vrot.lane.b32.xlu0 %v1297_v48, %s4724_s26  ;;  %s4728_s23 = smov 8  }
 0x265   : > { %v4375_v52 = vpop.permute.xlu1 %1305  ;;  %v4377_v53 = vpop.permute.xlu0 %1303 }
 0x266   : > { %1462 = vrot.lane.b32.xlu0 %v4375_v52, %s4724_s26  ;;  %1386 = vrot.lane.b32.xlu1 %v4377_v53, %s4724_s26 }
 0x269   : > { %v4383_v54 = vpop.permute.xlu1 %1307  ;;  %v1310_v55 = vpop.permute.xlu0 %1309 }
 0x26a   : > { %1538 = vrot.lane.b32.xlu1 %v4383_v54, %s4724_s26  ;;  %3701 = vmatpush3.xpose.msk.msra.mxu1 %vm1311_vm2, %v1310_v55  ;;  %s4729_s26 = smov 16  }
 0x26b   : > { %3705 = vmatprep.subr.mxu1 %v4090_v15 }
 0x26d   : > { %3703 = vmatmul.mubr.msk.f32.vlgmr.msra.gmra.mxu1 %vm1311_vm2, %v1297_v48 }
 0x26e   : > { %3707 = vmatprep.mubr.msk.f32.mxu1 %vm4091_vm0, %v4090_v15 }
 0x2d8   : > { %v1387_v56 = vpop.permute.xlu1 %1386  ;;  %v1463_v57 = vpop.permute.xlu0 %1462 }
 0x2d9   : > { %3706 = vmatpush3.xpose.msk.msra.mxu1 %vm1311_vm2, %v1387_v56  ;;  %3711 = vmatpush3.xpose.msk.msra.mxu0 %vm1311_vm2, %v1463_v57 }
 0x2da   : > { %3715 = vmatprep.subr.mxu1 %v4090_v15  ;;  %3720 = vmatprep.subr.mxu0 %v4090_v15 }
 0x2dc   : > { %v1539_v58 = vpop.permute.xlu1 %1538  ;;  %3708 = vmatmul.mubr.msk.f32.vlgmr.msra.gmra.mxu1 %vm1311_vm2, %v4377_v53  ;;  %3713 = vmatmul.mubr.msk.f32.vlgmr.msra.gmra.mxu0 %vm1311_vm2, %v4375_v52 }
 0x2dd   : > { %3716 = vmatpush3.xpose.msk.msra.mxu1 %vm1311_vm2, %v1539_v58  ;;  %3717 = vmatprep.mubr.msk.f32.mxu1 %vm4091_vm0, %v4090_v15 }
 0x2de   : > { %3722 = vmatprep.mubr.msk.f32.mxu0 %vm4091_vm0, %v4090_v15  ;;  %3725 = vmatprep.subr.mxu1 %v4090_v15 }
 0x2e0   : > { %3718 = vmatmul.mubr.msk.f32.vlgmr.msra.gmra.mxu1 %vm1311_vm2, %v4383_v54 }
 0x2e1   : > { %3727 = vmatprep.mubr.msk.f32.mxu1 %vm4091_vm0, %v4090_v15 }
 0x32d   : > { %v1382_v59 = vpop.f32.mrf.mxu1 }
 0x32e   : > { %v1614_v60 = vsel %vm1311_vm2, %v1382_v59, -inf }
 0x32f   : > { %1615 = vmax.xlane.f32.xlu0 %v1614_v60  ;;  %v3704_v61 = vpop.f32.mrf.mxu1 }
 0x39c   : > { %v1458_v62 = vpop.f32.mrf.mxu1  ;;  %v1534_v63 = vpop.f32.mrf.mxu0 }
 0x39d   : > { %v1620_v0 = vsel %vm1311_vm2, %v1534_v63, -inf  ;;  %v1617_v1 = vsel %vm1311_vm2, %v1458_v62, -inf }
 0x39e   : > { %v3714_v2 = vpop.f32.mrf.mxu0  ;;  %1621 = vmax.xlane.f32.xlu0 %v1620_v0  ;;  %1618 = vmax.xlane.f32.xlu1 %v1617_v1  ;;  %v3709_v3 = vpop.f32.mrf.mxu1 }
 0x3a0   : > { %v1610_v4 = vpop.f32.mrf.mxu1 }
 0x3a1   : > { %v1623_v5 = vsel %vm1311_vm2, %v1610_v4, -inf }
 0x3a2   : > { %1624 = vmax.xlane.f32.xlu0 %v1623_v5  ;;  %v3719_v6 = vpop.f32.mrf.mxu1 }
 0x3af   : > { %1658 = vrot.lane.b32.xlu1 %v1297_v48, %s4722_s30  ;;  %v3970_v48 = vld [vmem:[%s4710_s6] sm:$0xff]  }
 0x3b8   : > { %v1616_v7 = vpop.xlane.xlu0 %1615 }
 0x3b9   : > { %v1626_v8 = vsub.f32 %v1382_v59, %v1616_v7 }
 0x3bb   : > { %v1630_v9 = vmul.f32 1.442695, %v1626_v8 }
 0x3bd   : > { %3987 = vpow2.f32 %v1630_v9 }
 0x3ca   : > { %v3988_v10 = vpop.eup %3987 }
 0x3cb   : > { %v1638_v11 = vsel %vm1311_vm2, %v3988_v10, 0.0 }
 0x3d3   : > { %1639 = vadd.xlane.f32.xlu1 %v1638_v11  ;;  %v3971_v11 = vld [vmem:[%s4714_s10 + $0x8] sm:$0xff]  }
 0x427   : > { %v1622_v12 = vpop.xlane.xlu0 %1621  ;;  %v1619_v13 = vpop.xlane.xlu1 %1618 }
 0x428   : > { %v1628_v14 = vsub.f32 %v1534_v63, %v1622_v12  ;;  %v1627_v16 = vsub.f32 %v1458_v62, %v1619_v13  ;;  %v3459_v62 = vld [vmem:[%s4711_s7] ss:$0 sm:$0xff]  ;;  %v3973_v12 = vld [vmem:[%s4716_s12 + $0x18] sm:$0xff]   ;;  %v3974_v13 = vld [vmem:[%s4716_s12 + $0x10] sm:$0xff]  }
 0x42a   : > { %v1634_v17 = vmul.f32 1.442695, %v1628_v14  ;;  %v1632_v18 = vmul.f32 1.442695, %v1627_v16 }
 0x42b   : > { %v1659_v19 = vpop.permute.xlu1 %1658  ;;  %v1625_v20 = vpop.xlane.xlu0 %1624 }
 0x42c   : > { %3989 = vpow2.f32 %v1634_v17  ;;  %v1629_v21 = vsub.f32 %v1610_v4, %v1625_v20  ;;  %3721 = vmatpush3.msra.mxu0 %v1659_v19  ;;  %v3463_v19 = vld [vmem:[%s4712_s8] ss:$0 sm:$0xff] }
 0x42d   : > { %3991 = vpow2.f32 %v1632_v18  ;;  %3730 = vmatprep.subr.mxu0 %v4090_v15 }
 0x42e   : > { %v1636_v22 = vmul.f32 1.442695, %v1629_v21  ;;  %v3464_v21 = vld [vmem:[%s4713_s9] ss:$0 sm:$0xff] }
 0x430   : > { %3993 = vpow2.f32 %v1636_v22 }
 0x439   : > { %v3990_v23 = vpop.eup %3989 }
 0x43a   : > { %v3992_v24 = vpop.eup %3991  ;;  %v1644_v25 = vsel %vm1311_vm2, %v3990_v23, 0.0 }
 0x43b   : > { %1645 = vadd.xlane.f32.xlu1 %v1644_v25  ;;  %v1641_v26 = vsel %vm1311_vm2, %v3992_v24, 0.0  ;;  %v3975_v25 = vld [vmem:[%s4716_s12 + $0x8] sm:$0xff]  }
 0x43c   : > { %1642 = vadd.xlane.f32.xlu0 %v1641_v26  ;;  %v3976_v26 = vld [vmem:[%s4716_s12] sm:$0xff]  }
 0x43d   : > { %v3994_v27 = vpop.eup %3993 }
 0x43e   : > { %v1647_v28 = vsel %vm1311_vm2, %v3994_v27, 0.0 }
 0x440   : > { %1648 = vadd.xlane.f32.xlu0 %v1647_v28 }
 0x44c   : > { %1810 = vrot.lane.b32.xlu1 %v4375_v52, %s4722_s30 }
 0x450   : > { %1886 = vrot.lane.b32.xlu1 %v4383_v54, %s4722_s30 }
 0x456   : > { %1734 = vrot.lane.b32.xlu0 %v4377_v53, %s4722_s30  ;;  %s4748_s30 = smov 112  }
 0x45c   : > { %v1640_v29 = vpop.xlane.xlu1 %1639 }
 0x45d   : > { %3995 = vrcp.f32 %v1640_v29 }
 0x46a   : > { %v3996_v30 = vpop.eup %3995 }
 0x46b   : > { %v1651_v31 = vmul.f32 %v3996_v30, %v3988_v10 }
 0x46d   : > { %3723 = vmatmul.mubr.msk.f32.vlgmr.msra.gmra.mxu0 %vm1311_vm2, %v1651_v31 }
 0x46e   : > { %3732 = vmatprep.mubr.msk.f32.mxu0 %vm4091_vm0, %v4090_v15 }
 0x4c4   : > { %v1646_v32 = vpop.xlane.xlu1 %1645 }
 0x4c5   : > { %3997 = vrcp.f32 %v1646_v32  ;;  %v1643_v33 = vpop.xlane.xlu0 %1642 }
 0x4c6   : > { %3999 = vrcp.f32 %v1643_v33 }
 0x4c8   : > { %v1811_v34 = vpop.permute.xlu1 %1810 }
 0x4c9   : > { %v1649_v35 = vpop.xlane.xlu0 %1648  ;;  %3731 = vmatpush3.msra.mxu0 %v1811_v34 }
 0x4ca   : > { %4001 = vrcp.f32 %v1649_v35  ;;  %3740 = vmatprep.subr.bf16.mxu0 %v4090_v15  ;;  %v3469_v35 = vld [vmem:[%s4717_s13] ss:$0 sm:$0xff] }
 0x4cc   : > { %v1887_v41 = vpop.permute.xlu1 %1886 }
 0x4cd   : > { %v1735_v36 = vpop.permute.xlu0 %1734 }
 0x4ce   : > { %3726 = vmatpush3.msra.mxu1 %v1735_v36 }
 0x4cf   : > { %3735 = vmatprep.subr.mxu1 %v4090_v15 }
 0x4d2   : > { %v3998_v37 = vpop.eup %3997 }
 0x4d3   : > { %v4000_v38 = vpop.eup %3999  ;;  %v1655_v39 = vmul.f32 %v3998_v37, %v3990_v23 }
 0x4d4   : > { %v1653_v40 = vmul.f32 %v4000_v38, %v3992_v24 }
 0x4d5   : > { %3733 = vmatmul.mubr.msk.f32.vlgmr.msra.gmra.mxu0 %vm1311_vm2, %v1655_v39 }
 0x4d6   : > { %3728 = vmatmul.mubr.msk.f32.vlgmr.msra.gmra.mxu1 %vm1311_vm2, %v1653_v40  ;;  %3744 = vmatprep.mubr.msk.bf16.mxu0 %vm4091_vm0, %v4090_v15 }
 0x4d7   : > { %v4002_v42 = vpop.eup %4001  ;;  %3736 = vmatpush3.msra.mxu1 %v1887_v41  ;;  %3737 = vmatprep.mubr.msk.f32.mxu1 %vm4091_vm0, %v4090_v15 }
 0x4d8   : > { %v1657_v43 = vmul.f32 %v4002_v42, %v3994_v27  ;;  %3748 = vmatprep.subr.bf16.mxu1 %v4090_v15  ;;  %3741 = vmatpush3.bf16.msra.mxu0 %v3969_v47  ;;  %v3465_v27 = vld [vmem:[%s4715_s11] ss:$0 sm:$0xff] }
 0x4d9   : > { %3742 = vmatprep.subr.bf16.mxu0 %v4090_v15 }
 0x4da   : > { %3738 = vmatmul.mubr.msk.f32.vlgmr.msra.gmra.mxu1 %vm1311_vm2, %v1657_v43 }
 0x4db   : > { %3752 = vmatprep.mubr.msk.bf16.mxu1 %vm4091_vm0, %v4090_v15  ;;  %3749 = vmatpush3.bf16.msra.mxu1 %v3971_v11 }
 0x4dc   : > { %3743 = vmatpush3.bf16.msra.mxu0 %v3970_v48  ;;  %3750 = vmatprep.subr.bf16.mxu1 %v4090_v15 }
 0x4dd   : > { %3756 = vmatprep.subr.bf16.mxu0 %v4090_v15 }
 0x52d   : > { %v1730_v45 = vpop.f32.mrf.mxu0 }
 0x52f   : > { %v3724_v46 = vpop.f32.mrf.mxu0 }
 0x595   : > { %v1882_v49 = vpop.f32.mrf.mxu0 }
 0x596   : > { %v1806_v50 = vpop.f32.mrf.mxu1  ;;  %1967 = vrot.lane.b32.xlu1 %v1882_v49, %s4729_s26  ;;  %v3977_v49 = vld [vmem:[%s4745_s4 + $0x18] sm:$0xff]   ;;  %s4100_s26 = smov [#allocation2]  }
 0x597   : > { %1963 = vrot.lane.b32.xlu0 %v1806_v50, %s4728_s23  ;;  %v3734_v51 = vpop.f32.mrf.mxu0  ;;  %v3978_v50 = vld [vmem:[%s4745_s4 + $0x10] sm:$0xff]   ;;  %s4752_s23 = smov 64   ;;  %s4031_s19 = sshll.u32 %s4100_s26, 4  ;;  %s4032_s19 = int_to_ptr.vmem [resolvable:$false] %s4031_s19 }
 0x598   : > { %v3729_v52 = vpop.f32.mrf.mxu1 }
 0x59a   : > { %v1958_v53 = vpop.f32.mrf.mxu1 }
 0x59b   : > { %1971 = vrot.lane.b32.xlu0 %v1958_v53, %s4727_s28  ;;  %s4750_s28 = smov 104  }
 0x59c   : > { %v3739_v54 = vpop.f32.mrf.mxu1 }
 0x608   : > { %v1968_v56 = vpop.permute.xlu1 %1967 }
 0x609   : > { %v1964_v55 = vpop.permute.xlu0 %1963 }
 0x60a   : > { %v1974_v57 = vsel %vm1311_vm2, %v1730_v45, %v1964_v55  ;;  %v3475_v55 = vld [vmem:[%s4718_s14] ss:$0 sm:$0xff] }
 0x60b   : > { %v1976_v58 = vsel %vm1975_vm3, %v1974_v57, %v1968_v56  ;;  %v3476_v57 = vld [vmem:[%s4719_s15] ss:$0 sm:$0xff] }
 0x60d   : > { %v1972_v59 = vpop.permute.xlu0 %1971 }
 0x60e   : > { %v1978_v60 = vsel %vm1977_vm4, %v1976_v58, %v1972_v59 }
 0x60f   : > { %v1979_v61 = vpack.c.bf16 %v1978_v60, %v1978_v60 }
 0x611   : > { %3745 = vmatmul.mubr.msk.bf16.vlgmr.msra.gmra.mxu0 %vm1258_vm1, %v1979_v61  ;;  %v3482_v61 = vld [vmem:[%s4747_s5 + $0x1] ss:$0 sm:$0xff] }
 0x612   : > { %3764 = vmatprep.mubr.msk.bf16.mxu0 %vm4091_vm0, %v4090_v15  ;;  %3757 = vmatpush3.bf16.msra.mxu0 %v3973_v12 }
 0x613   : > { %3758 = vmatprep.subr.bf16.mxu0 %v4090_v15 }
 0x616   : > { %3759 = vmatpush3.bf16.msra.mxu0 %v3974_v13 }
 0x617   : > { %3760 = vmatprep.subr.bf16.mxu0 %v4090_v15 }
 0x61a   : > { %3761 = vmatpush3.bf16.msra.mxu0 %v3975_v25 }
 0x61b   : > { %3762 = vmatprep.subr.bf16.mxu0 %v4090_v15 }
 0x61e   : > { %3763 = vmatpush3.bf16.msra.mxu0 %v3976_v26 }
 0x61f   : > { %3786 = vmatprep.subr.mxu0 %v4090_v15 }
 0x6d1   : > { %v2040_v63 = vpop.f32.mrf.mxu0 }
 0x6d2   : > { %v2041_v0 = vadd.f32 %v3459_v62, %v2040_v63 }
 0x6d3   : > { %v3746_v1 = vpop.f32.mrf.mxu0 }
 0x6d4   : > { %v2046_v2 = vadd.f32 %v2041_v0, %v4361_v44  ;;  %v3972_v44 = vld [vmem:[%s4714_s10] sm:$0xff]  }
 0x6d5   : > { %v2043_v3 = vpop.f32.mrf.mxu0  ;;  %3751 = vmatpush3.bf16.msra.mxu1 %v3972_v44 }
 0x6d6   : > { %v2047_v4 = vsel %vm1258_vm1, %v2046_v2, 0.0  ;;  %3768 = vmatprep.subr.bf16.mxu1 %v4090_v15 }
 0x6d7   : > { %2048 = vadd.xlane.f32.xlu1 %v2047_v4  ;;  %v3747_v5 = vpop.f32.mrf.mxu0 }
 0x760   : > { %v2049_v6 = vpop.xlane.xlu1 %2048 }
 0x761   : > { %v2051_v7 = vmul.f32 0.03125, %v2049_v6 }
 0x763   : > { %v2052_v8 = vsub.f32 %v2046_v2, %v2051_v7 }
 0x765   : > { %v2053_v9 = vmul.f32 %v2052_v8, %v2052_v8 }
 0x767   : > { %v2054_v10 = vsel %vm1258_vm1, %v2053_v9, 0.0 }
 0x768   : > { %2055 = vadd.xlane.f32.xlu0 %v2054_v10 }
 0x7f1   : > { %v2056_v14 = vpop.xlane.xlu0 %2055 }
 0x7f2   : > { %v2057_v16 = vmul.f32 0.03125, %v2056_v14 }
 0x7f4   : > { %v2058_v17 = vadd.f32 1e-05, %v2057_v16 }
 0x7f6   : > { %4003 = vrsqrt.f32 %v2058_v17 }
 0x803   : > { %v4004_v18 = vpop.eup %4003 }
 0x804   : > { %v2060_v20 = vmul.f32 %v4004_v18, %v2052_v8 }
 0x806   : > { %v2068_v22 = vmul.f32 %v3463_v19, %v2060_v20 }
 0x808   : > { %v2076_v23 = vadd.f32 %v3464_v21, %v2068_v22 }
 0x80a   : > { %v2077_v24 = vpack.c.bf16 %v2076_v23, %v2076_v23 }
 0x80c   : > { %3753 = vmatmul.mubr.msk.bf16.vlgmr.msra.gmra.mxu1 %vm1258_vm1, %v2077_v24 }
 0x80d   : > { %3772 = vmatprep.mubr.msk.bf16.mxu1 %vm4091_vm0, %v4090_v15  ;;  %3769 = vmatpush3.bf16.msra.mxu1 %v3977_v49 }
 0x80e   : > { %3770 = vmatprep.subr.bf16.mxu1 %v4090_v15 }
 0x811   : > { %3771 = vmatpush3.bf16.msra.mxu1 %v3978_v50 }
 0x812   : > { %3776 = vmatprep.subr.mxu1 %v4090_v15 }
 0x8cc   : > { %v2138_v28 = vpop.f32.mrf.mxu1 }
 0x8cd   : > { %v2139_v29 = vadd.f32 %v3465_v27, %v2138_v28 }
 0x8ce   : > { %v3754_v30 = vpop.f32.mrf.mxu1 }
 0x8cf   : > { %v2144_v31 = vmax.f32 %v2139_v29, 0.0 }
 0x8d0   : > { %v2141_v32 = vpop.f32.mrf.mxu1 }
 0x8d1   : > { %v2145_v33 = vpack.c.bf16 %v2144_v31, %v2144_v31 }
 0x8d2   : > { %v3755_v34 = vpop.f32.mrf.mxu1 }
 0x8d3   : > { %3765 = vmatmul.mubr.msk.bf16.vlgmr.msra.gmra.mxu0 %vm2185_vm5, %v2145_v33 }
 0x8d4   : > { %3788 = vmatprep.mubr.msk.f32.mxu0 %vm4091_vm0, %v4090_v15 }
 0x993   : > { %v2223_v36 = vpop.f32.mrf.mxu0 }
 0x994   : > { %v2224_v37 = vadd.f32 %v3469_v35, %v2223_v36 }
 0x995   : > { %v3766_v38 = vpop.f32.mrf.mxu0 }
 0x996   : > { %v2229_v39 = vadd.f32 %v2224_v37, %v2076_v23 }
 0x997   : > { %v2226_v40 = vpop.f32.mrf.mxu0 }
 0x998   : > { %v2230_v41 = vsel %vm1258_vm1, %v2229_v39, 0.0 }
 0x999   : > { %2231 = vadd.xlane.f32.xlu0 %v2230_v41  ;;  %v3767_v42 = vpop.f32.mrf.mxu0 }
 0xa22   : > { %v2232_v43 = vpop.xlane.xlu0 %2231 }
 0xa23   : > { %v2233_v45 = vmul.f32 0.03125, %v2232_v43 }
 0xa25   : > { %v2234_v46 = vsub.f32 %v2229_v39, %v2233_v45 }
 0xa27   : > { %v2235_v47 = vmul.f32 %v2234_v46, %v2234_v46 }
 0xa29   : > { %v2236_v48 = vsel %vm1258_vm1, %v2235_v47, 0.0 }
 0xa2a   : > { %2237 = vadd.xlane.f32.xlu1 %v2236_v48 }
 0xab3   : > { %v2238_v51 = vpop.xlane.xlu1 %2237 }
 0xab4   : > { %v2239_v52 = vmul.f32 0.03125, %v2238_v51 }
 0xab6   : > { %v2240_v53 = vadd.f32 1e-05, %v2239_v52 }
 0xab8   : > { %4005 = vrsqrt.f32 %v2240_v53 }
 0xac5   : > { %v4006_v54 = vpop.eup %4005 }
 0xac6   : > { %v2242_v56 = vmul.f32 %v4006_v54, %v2234_v46 }
 0xac8   : > { %v2250_v58 = vmul.f32 %v3475_v55, %v2242_v56 }
 0xaca   : > { %v4522_v59 = vadd.f32 %v3476_v57, %v2250_v58 }
 0xacc   : > { %v2259_v60 = vpack.c.bf16 %v4522_v59, %v4522_v59 }
 0xace   : > { %3773 = vmatmul.mubr.msk.bf16.vlgmr.msra.gmra.mxu1 %vm1258_vm1, %v2259_v60 }
 0xacf   : > { %3778 = vmatprep.mubr.msk.f32.mxu1 %vm4091_vm0, %v4090_v15 }
 0xb8e   : > { %v2322_v62 = vpop.f32.mrf.mxu1 }
 0xb8f   : > { %v2323_v63 = vadd.f32 %v3482_v61, %v2322_v62  ;;  %v3979_v62 = vld [vmem:[%s4710_s6 + $0x18] sm:$0xff]  }
 0xb90   : > { %v3774_v0 = vpop.f32.mrf.mxu1 }
 0xb91   : > { %2331 = vrot.lane.b32.xlu1 %v2323_v63, %s4748_s30  ;;  %2329 = vrot.lane.b32.xlu0 %v2323_v63, %s4749_s29  ;;  %s4753_s29 = smov 16   ;;  %s3540_s30 = sshll.u32 %s4207_s25, 7 }
 0xb92   : > { %v2325_v1 = vpop.f32.mrf.mxu1  ;;  %s3303_s4 = scalar_lea.hbm %s4720_s16, %s3540_s30  ;;  %s4033_s25 = scalar_lea.vmem %s4032_s19, 256 }
 0xb94   : > { %v3775_v2 = vpop.f32.mrf.mxu1 }
 0xb95   : > { %2333 = vrot.lane.b32.xlu1 %v2323_v63, %s4750_s28  ;;  %2335 = vrot.lane.b32.xlu0 %v2323_v63, %s4751_s18  ;;  %s4754_s28 = smov 8  }
 0xc03   : > { %v4536_v3 = vpop.permute.xlu1 %2331  ;;  %v4538_v4 = vpop.permute.xlu0 %2329 }
 0xc04   : > { %2487 = vrot.lane.b32.xlu0 %v4536_v3, %s4751_s18  ;;  %2411 = vrot.lane.b32.xlu1 %v4538_v4, %s4751_s18 }
 0xc07   : > { %v4544_v5 = vpop.permute.xlu1 %2333  ;;  %v2336_v6 = vpop.permute.xlu0 %2335 }
 0xc08   : > { %2563 = vrot.lane.b32.xlu1 %v4544_v5, %s4751_s18  ;;  %3777 = vmatpush3.xpose.msk.msra.mxu1 %vm1311_vm2, %v2336_v6  ;;  %s4755_s18 = smov 24  }
 0xc09   : > { %3781 = vmatprep.subr.mxu1 %v4090_v15 }
 0xc0b   : > { %3779 = vmatmul.mubr.msk.f32.vlgmr.msra.gmra.mxu1 %vm1311_vm2, %v2323_v63 }
 0xc0c   : > { %3783 = vmatprep.mubr.msk.f32.mxu1 %vm4091_vm0, %v4090_v15 }
 0xc76   : > { %v2412_v7 = vpop.permute.xlu1 %2411  ;;  %v2488_v8 = vpop.permute.xlu0 %2487 }
 0xc77   : > { %3782 = vmatpush3.xpose.msk.msra.mxu1 %vm1311_vm2, %v2412_v7  ;;  %3787 = vmatpush3.xpose.msk.msra.mxu0 %vm1311_vm2, %v2488_v8 }
 0xc78   : > { %3791 = vmatprep.subr.mxu1 %v4090_v15  ;;  %3796 = vmatprep.subr.mxu0 %v4090_v15 }
 0xc7a   : > { %v2564_v9 = vpop.permute.xlu1 %2563  ;;  %3784 = vmatmul.mubr.msk.f32.vlgmr.msra.gmra.mxu1 %vm1311_vm2, %v4538_v4  ;;  %3789 = vmatmul.mubr.msk.f32.vlgmr.msra.gmra.mxu0 %vm1311_vm2, %v4536_v3 }
 0xc7b   : > { %3792 = vmatpush3.xpose.msk.msra.mxu1 %vm1311_vm2, %v2564_v9  ;;  %3793 = vmatprep.mubr.msk.f32.mxu1 %vm4091_vm0, %v4090_v15 }
 0xc7c   : > { %3798 = vmatprep.mubr.msk.f32.mxu0 %vm4091_vm0, %v4090_v15  ;;  %3801 = vmatprep.subr.mxu1 %v4090_v15 }
 0xc7e   : > { %3794 = vmatmul.mubr.msk.f32.vlgmr.msra.gmra.mxu1 %vm1311_vm2, %v4544_v5 }
 0xc7f   : > { %3803 = vmatprep.mubr.msk.f32.mxu1 %vm4091_vm0, %v4090_v15 }
 0xccb   : > { %v2407_v10 = vpop.f32.mrf.mxu1 }
 0xccc   : > { %v2639_v11 = vsel %vm1311_vm2, %v2407_v10, -inf }
 0xccd   : > { %2640 = vmax.xlane.f32.xlu0 %v2639_v11  ;;  %v3780_v44 = vpop.f32.mrf.mxu1 }
 0xd3a   : > { %v2483_v12 = vpop.f32.mrf.mxu1  ;;  %v2559_v13 = vpop.f32.mrf.mxu0 }
 0xd3b   : > { %v2645_v14 = vsel %vm1311_vm2, %v2559_v13, -inf  ;;  %v2642_v16 = vsel %vm1311_vm2, %v2483_v12, -inf }
 0xd3c   : > { %v3790_v17 = vpop.f32.mrf.mxu0  ;;  %2646 = vmax.xlane.f32.xlu0 %v2645_v14  ;;  %2643 = vmax.xlane.f32.xlu1 %v2642_v16  ;;  %v3785_v18 = vpop.f32.mrf.mxu1 }
 0xd3e   : > { %v2635_v19 = vpop.f32.mrf.mxu1 }
 0xd3f   : > { %v2648_v20 = vsel %vm1311_vm2, %v2635_v19, -inf }
 0xd40   : > { %2649 = vmax.xlane.f32.xlu0 %v2648_v20  ;;  %v3795_v21 = vpop.f32.mrf.mxu1 }
 0xd4d   : > { %2683 = vrot.lane.b32.xlu1 %v2323_v63, %s4752_s23  ;;  %v3980_v63 = vld [vmem:[%s4710_s6 + $0x10] sm:$0xff]  }
 0xd56   : > { %v2641_v22 = vpop.xlane.xlu0 %2640 }
 0xd57   : > { %v2651_v23 = vsub.f32 %v2407_v10, %v2641_v22 }
 0xd59   : > { %v2655_v24 = vmul.f32 1.442695, %v2651_v23 }
 0xd5b   : > { %4007 = vpow2.f32 %v2655_v24 }
 0xd68   : > { %v4008_v25 = vpop.eup %4007 }
 0xd69   : > { %v2663_v26 = vsel %vm1311_vm2, %v4008_v25, 0.0 }
 0xd71   : > { %2664 = vadd.xlane.f32.xlu1 %v2663_v26  ;;  %v3981_v26 = vld [vmem:[%s4714_s10 + $0x18] sm:$0xff]  }
 0xdc5   : > { %v2647_v27 = vpop.xlane.xlu0 %2646  ;;  %v2644_v28 = vpop.xlane.xlu1 %2643 }
 0xdc6   : > { %v2653_v29 = vsub.f32 %v2559_v13, %v2647_v27  ;;  %v2652_v30 = vsub.f32 %v2483_v12, %v2644_v28  ;;  %v3503_v12 = vld [vmem:[%s4711_s7 + $0x1] ss:$0 sm:$0xff]  ;;  %v3983_v27 = vld [vmem:[%s4716_s12 + $0x38] sm:$0xff]   ;;  %v3984_v28 = vld [vmem:[%s4716_s12 + $0x30] sm:$0xff]  }
 0xdc8   : > { %v2659_v31 = vmul.f32 1.442695, %v2653_v29  ;;  %v2657_v32 = vmul.f32 1.442695, %v2652_v30 }
 0xdc9   : > { %v2684_v33 = vpop.permute.xlu1 %2683  ;;  %v2650_v34 = vpop.xlane.xlu0 %2649 }
 0xdca   : > { %4009 = vpow2.f32 %v2659_v31  ;;  %v2654_v35 = vsub.f32 %v2635_v19, %v2650_v34  ;;  %3797 = vmatpush3.msra.mxu0 %v2684_v33  ;;  %v3508_v33 = vld [vmem:[%s4712_s8 + $0x1] ss:$0 sm:$0xff] }
 0xdcb   : > { %4011 = vpow2.f32 %v2657_v32  ;;  %3806 = vmatprep.subr.mxu0 %v4090_v15 }
 0xdcc   : > { %v2661_v36 = vmul.f32 1.442695, %v2654_v35  ;;  %v3510_v35 = vld [vmem:[%s4713_s9 + $0x1] ss:$0 sm:$0xff] }
 0xdce   : > { %4013 = vpow2.f32 %v2661_v36 }
 0xdd7   : > { %v4010_v37 = vpop.eup %4009 }
 0xdd8   : > { %v4012_v38 = vpop.eup %4011  ;;  %v2669_v39 = vsel %vm1311_vm2, %v4010_v37, 0.0 }
 0xdd9   : > { %2670 = vadd.xlane.f32.xlu1 %v2669_v39  ;;  %v2666_v40 = vsel %vm1311_vm2, %v4012_v38, 0.0  ;;  %v3985_v39 = vld [vmem:[%s4716_s12 + $0x28] sm:$0xff]  }
 0xdda   : > { %2667 = vadd.xlane.f32.xlu0 %v2666_v40  ;;  %v3986_v40 = vld [vmem:[%s4716_s12 + $0x20] sm:$0xff]  }
 0xddb   : > { %v4014_v41 = vpop.eup %4013 }
 0xddc   : > { %v2672_v42 = vsel %vm1311_vm2, %v4014_v41, 0.0 }
 0xdde   : > { %2673 = vadd.xlane.f32.xlu0 %v2672_v42 }
 0xdea   : > { %2835 = vrot.lane.b32.xlu1 %v4536_v3, %s4752_s23 }
 0xdee   : > { %2911 = vrot.lane.b32.xlu1 %v4544_v5, %s4752_s23 }
 0xdf4   : > { %2759 = vrot.lane.b32.xlu0 %v4538_v4, %s4752_s23 }
 0xdfa   : > { %v2665_v43 = vpop.xlane.xlu1 %2664 }
 0xdfb   : > { %4015 = vrcp.f32 %v2665_v43 }
 0xe08   : > { %v4016_v45 = vpop.eup %4015 }
 0xe09   : > { %v2676_v46 = vmul.f32 %v4016_v45, %v4008_v25 }
 0xe0b   : > { %3799 = vmatmul.mubr.msk.f32.vlgmr.msra.gmra.mxu0 %vm1311_vm2, %v2676_v46 }
 0xe0c   : > { %3808 = vmatprep.mubr.msk.f32.mxu0 %vm4091_vm0, %v4090_v15 }
 0xe62   : > { %v2671_v47 = vpop.xlane.xlu1 %2670 }
 0xe63   : > { %4017 = vrcp.f32 %v2671_v47  ;;  %v2668_v48 = vpop.xlane.xlu0 %2667 }
 0xe64   : > { %4019 = vrcp.f32 %v2668_v48 }
 0xe66   : > { %v2836_v49 = vpop.permute.xlu1 %2835 }
 0xe67   : > { %v2674_v50 = vpop.xlane.xlu0 %2673  ;;  %3807 = vmatpush3.msra.mxu0 %v2836_v49 }
 0xe68   : > { %4021 = vrcp.f32 %v2674_v50  ;;  %3816 = vmatprep.subr.bf16.mxu0 %v4090_v15 }
 0xe6a   : > { %v2912_v56 = vpop.permute.xlu1 %2911 }
 0xe6b   : > { %v2760_v51 = vpop.permute.xlu0 %2759 }
 0xe6c   : > { %3802 = vmatpush3.msra.mxu1 %v2760_v51 }
 0xe6d   : > { %3811 = vmatprep.subr.mxu1 %v4090_v15 }
 0xe70   : > { %v4018_v52 = vpop.eup %4017 }
 0xe71   : > { %v4020_v53 = vpop.eup %4019  ;;  %v2680_v54 = vmul.f32 %v4018_v52, %v4010_v37 }
 0xe72   : > { %v2678_v55 = vmul.f32 %v4020_v53, %v4012_v38 }
 0xe73   : > { %3809 = vmatmul.mubr.msk.f32.vlgmr.msra.gmra.mxu0 %vm1311_vm2, %v2680_v54 }
 0xe74   : > { %3804 = vmatmul.mubr.msk.f32.vlgmr.msra.gmra.mxu1 %vm1311_vm2, %v2678_v55  ;;  %3820 = vmatprep.mubr.msk.bf16.mxu0 %vm4091_vm0, %v4090_v15 }
 0xe75   : > { %v4022_v57 = vpop.eup %4021  ;;  %3812 = vmatpush3.msra.mxu1 %v2912_v56  ;;  %3813 = vmatprep.mubr.msk.f32.mxu1 %vm4091_vm0, %v4090_v15 }
 0xe76   : > { %v2682_v58 = vmul.f32 %v4022_v57, %v4014_v41  ;;  %3824 = vmatprep.subr.bf16.mxu1 %v4090_v15  ;;  %3817 = vmatpush3.bf16.msra.mxu0 %v3979_v62  ;;  %v3516_v41 = vld [vmem:[%s4715_s11 + $0x1] ss:$0 sm:$0xff] }
 0xe77   : > { %3818 = vmatprep.subr.bf16.mxu0 %v4090_v15 }
 0xe78   : > { %3814 = vmatmul.mubr.msk.f32.vlgmr.msra.gmra.mxu1 %vm1311_vm2, %v2682_v58 }
 0xe79   : > { %3828 = vmatprep.mubr.msk.bf16.mxu1 %vm4091_vm0, %v4090_v15  ;;  %3825 = vmatpush3.bf16.msra.mxu1 %v3981_v26 }
 0xe7a   : > { %3819 = vmatpush3.bf16.msra.mxu0 %v3980_v63  ;;  %3826 = vmatprep.subr.bf16.mxu1 %v4090_v15 }
 0xe7b   : > { %3832 = vmatprep.subr.bf16.mxu0 %v4090_v15 }
 0xecb   : > { %v2755_v60 = vpop.f32.mrf.mxu0 }
 0xecd   : > { %v3800_v61 = vpop.f32.mrf.mxu0 }
 0xf33   : > { %v2907_v0 = vpop.f32.mrf.mxu0 }
 0xf34   : > { %v2831_v1 = vpop.f32.mrf.mxu1  ;;  %2992 = vrot.lane.b32.xlu1 %v2907_v0, %s4753_s29 }
 0xf35   : > { %2988 = vrot.lane.b32.xlu0 %v2831_v1, %s4754_s28  ;;  %v3810_v2 = vpop.f32.mrf.mxu0  ;;  %s512_s28 = sand.u32 1, %s4079_s22  }
 0xf36   : > { %v3805_v3 = vpop.f32.mrf.mxu1  ;;  %s3292_s5 = scalar_lea.sflag [#allocation3], %s512_s28 }
 0xf37   : > { %v3536_v3 = vld [vmem:[%s4718_s14 + $0x1] ss:$0 sm:$0xff] }
 0xf38   : > { %v2983_v4 = vpop.f32.mrf.mxu1 }
 0xf39   : > { %2996 = vrot.lane.b32.xlu0 %v2983_v4, %s4755_s18  ;;  %s3368_s18 = sshll.u32 %s512_s28, 3 }
 0xf3a   : > { %v3815_v5 = vpop.f32.mrf.mxu1  ;;  %s514_s29 = scalar_lea.vmem [#allocation2], %s3368_s18 }
 0xf3b   : > { %v3538_v5 = vld [vmem:[%s4719_s15 + $0x1] ss:$0 sm:$0xff]  ;;  %s3305_s1 = sshll.u32 %s514_s29, 4  ;;  %s3306_s1 = int_to_ptr.vmem [resolvable:$true] %s3305_s1 }
 0xf3c   : > { %s4027_s23 = scalar_lea.vmem %s3306_s1, 128  ;;  %p4034_p0 = scmp.lt.s32.totalorder %s3306_s1, %s4032_s19 }
 0xf3d   : > { %p4028_p11 = scmp.ne.s32.totalorder %s3306_s1, %s4027_s23  ;;  %p4035_p1 = scmp.lt.s32.totalorder %s4033_s25, %s4027_s23 }
 0xf3f   : > { %p4029_p12 = pnand %p4028_p11, %p4224_p5  ;;  %p4036_p2 = por %p4035_p1, %p4034_p0 }
 0xf41   : > { %p4030_p13 = pneg %p4029_p12 }
 0xf43   : > { %p4037_p3 = pnand %p4036_p2, %p4030_p13 }
 0xfa6   : > { %v2993_v7 = vpop.permute.xlu1 %2992 }
 0xfa7   : > { %v2989_v6 = vpop.permute.xlu0 %2988 }
 0xfa8   : > { %v2999_v8 = vsel %vm1311_vm2, %v2755_v60, %v2989_v6 }
 0xfa9   : > { %v3000_v9 = vsel %vm1975_vm3, %v2999_v8, %v2993_v7 }
 0xfab   : > { %v2997_v10 = vpop.permute.xlu0 %2996 }
 0xfac   : > { %v3001_v11 = vsel %vm1977_vm4, %v3000_v9, %v2997_v10 }
 0xfad   : > { %v3002_v44 = vpack.c.bf16 %v3001_v11, %v3001_v11 }
 0xfaf   : > { %3821 = vmatmul.mubr.msk.bf16.vlgmr.msra.gmra.mxu0 %vm1258_vm1, %v3002_v44 }
 0xfb0   : > { %3840 = vmatprep.mubr.msk.bf16.mxu0 %vm4091_vm0, %v4090_v15  ;;  %3833 = vmatpush3.bf16.msra.mxu0 %v3983_v27 }
 0xfb1   : > { %3834 = vmatprep.subr.bf16.mxu0 %v4090_v15 }
 0xfb4   : > { %3835 = vmatpush3.bf16.msra.mxu0 %v3984_v28 }
 0xfb5   : > { %3836 = vmatprep.subr.bf16.mxu0 %v4090_v15 }
 0xfb8   : > { %3837 = vmatpush3.bf16.msra.mxu0 %v3985_v39 }
 0xfb9   : > { %3838 = vmatprep.subr.bf16.mxu0 %v4090_v15  ;;  %v3529_v15 = vld [vmem:[%s4717_s13 + $0x1] ss:$0 sm:$0xff] }
 0xfbc   : > { %3839 = vmatpush3.bf16.msra.mxu0 %v3986_v40 }
0x106f   : > { %v3065_v13 = vpop.f32.mrf.mxu0 }
0x1070   : > { %v3066_v14 = vadd.f32 %v3503_v12, %v3065_v13 }
0x1071   : > { %v3822_v16 = vpop.f32.mrf.mxu0 }
0x1072   : > { %v3071_v17 = vadd.f32 %v3066_v14, %v4522_v59  ;;  %v3982_v59 = vld [vmem:[%s4714_s10 + $0x10] sm:$0xff]  }
0x1073   : > { %v3068_v18 = vpop.f32.mrf.mxu0  ;;  %3827 = vmatpush3.bf16.msra.mxu1 %v3982_v59 }
0x1074   : > { %v3072_v19 = vsel %vm1258_vm1, %v3071_v17, 0.0 }
0x1075   : > { %3073 = vadd.xlane.f32.xlu1 %v3072_v19  ;;  %v3823_v20 = vpop.f32.mrf.mxu0 }
0x10fe   : > { %v3074_v21 = vpop.xlane.xlu1 %3073 }
0x10ff   : > { %v3075_v22 = vmul.f32 0.03125, %v3074_v21 }
0x1101   : > { %v3076_v23 = vsub.f32 %v3071_v17, %v3075_v22 }
0x1103   : > { %v3077_v24 = vmul.f32 %v3076_v23, %v3076_v23 }
0x1105   : > { %v3078_v25 = vsel %vm1258_vm1, %v3077_v24, 0.0 }
0x1106   : > { %3079 = vadd.xlane.f32.xlu0 %v3078_v25 }
0x118f   : > { %v3080_v29 = vpop.xlane.xlu0 %3079 }
0x1190   : > { %v3081_v30 = vmul.f32 0.03125, %v3080_v29 }
0x1192   : > { %v3082_v31 = vadd.f32 1e-05, %v3081_v30 }
0x1194   : > { %4023 = vrsqrt.f32 %v3082_v31 }
0x11a1   : > { %v4024_v32 = vpop.eup %4023 }
0x11a2   : > { %v3084_v34 = vmul.f32 %v4024_v32, %v3076_v23 }
0x11a4   : > { %v3093_v36 = vmul.f32 %v3508_v33, %v3084_v34 }
0x11a6   : > { %v3102_v37 = vadd.f32 %v3510_v35, %v3093_v36 }
0x11a8   : > { %v3103_v38 = vpack.c.bf16 %v3102_v37, %v3102_v37 }
0x11aa   : > { %3829 = vmatmul.mubr.msk.bf16.vlgmr.msra.gmra.mxu1 %vm1258_vm1, %v3103_v38 }
0x126a   : > { %v3166_v42 = vpop.f32.mrf.mxu1 }
0x126b   : > { %v3167_v43 = vadd.f32 %v3516_v41, %v3166_v42 }
0x126c   : > { %v3830_v45 = vpop.f32.mrf.mxu1 }
0x126d   : > { %v3172_v46 = vmax.f32 %v3167_v43, 0.0 }
0x126e   : > { %v3169_v47 = vpop.f32.mrf.mxu1 }
0x126f   : > { %v3173_v48 = vpack.c.bf16 %v3172_v46, %v3172_v46 }
0x1270   : > { %v3831_v49 = vpop.f32.mrf.mxu1 }
0x1271   : > { %3841 = vmatmul.mubr.msk.bf16.vlgmr.msra.gmra.mxu0 %vm2185_vm5, %v3173_v48 }
0x1331   : > { %v3252_v50 = vpop.f32.mrf.mxu0 }
0x1332   : > { %v3253_v51 = vadd.f32 %v3529_v15, %v3252_v50 }
0x1333   : > { %v3842_v52 = vpop.f32.mrf.mxu0 }
0x1334   : > { %v3258_v53 = vadd.f32 %v3253_v51, %v3102_v37 }
0x1335   : > { %v3255_v54 = vpop.f32.mrf.mxu0 }
0x1336   : > { %v3259_v55 = vsel %vm1258_vm1, %v3258_v53, 0.0 }
0x1337   : > { %3260 = vadd.xlane.f32.xlu0 %v3259_v55  ;;  %v3843_v56 = vpop.f32.mrf.mxu0 }
0x13c0   : > { %v3261_v57 = vpop.xlane.xlu0 %3260 }
0x13c1   : > { %v3262_v58 = vmul.f32 0.03125, %v3261_v57 }
0x13c3   : > { %v3263_v60 = vsub.f32 %v3258_v53, %v3262_v58 }
0x13c5   : > { %v3264_v61 = vmul.f32 %v3263_v60, %v3263_v60 }
0x13c7   : > { %v3265_v62 = vsel %vm1258_vm1, %v3264_v61, 0.0 }
0x13c8   : > { %3266 = vadd.xlane.f32.xlu1 %v3265_v62 }
0x1451   : > { %v3267_v63 = vpop.xlane.xlu1 %3266 }
0x1452   : > { %v3268_v0 = vmul.f32 0.03125, %v3267_v63 }
0x1454   : > { %v3269_v1 = vadd.f32 1e-05, %v3268_v0 }
0x1456   : > { %4025 = vrsqrt.f32 %v3269_v1 }
0x1463   : > { %v4026_v2 = vpop.eup %4025 }
0x1464   : > { %v3271_v4 = vmul.f32 %v4026_v2, %v3263_v60 }
0x1466   : > { %v3280_v6 = vmul.f32 %v3536_v3, %v3271_v4 }
0x1468   : > { %v3289_v7 = vadd.f32 %v3538_v5, %v3280_v6 }
0x146a   : > { %3290 = vst.msk [vmem:[%s514_s29] sm:$0xff] %vm1258_vm1, %v3289_v7 }
0x146b   : > { %4040 = shalt.err (!%p4037_p3)
}
0x146c   : > { %s4041_s2 = scalar_lea.hbm %s3303_s4, 128  ;;  %s4045_s18 = scalar_lea.hbm %s4720_s16, 256 }
0x146d   : > { %p4042_p4 = scmp.ne.s32.totalorder %s3303_s4, %s4041_s2  ;;  %p4046_p9 = scmp.lt.s32.totalorder %s3303_s4, %s4720_s16 }
0x146e   : > { %p4047_p10 = scmp.lt.s32.totalorder %s4045_s18, %s4041_s2 }
0x146f   : > { %p4043_p7 = pnand %p4042_p4, %p4224_p5 }
0x1470   : > { %p4048_p11 = por %p4047_p10, %p4046_p9 }
0x1471   : > { %p4044_p8 = pneg %p4043_p7 }
0x1473   : > { %p4049_p12 = pnand %p4048_p11, %p4044_p8 }
0x1475   : > { %4052 = shalt.err (!%p4049_p12)
}
0x1476   : > { %3844 = dma.vmem_to_hbm [thread:$0]  (%p4224_p5), %s3306_s1, 128, %s3303_s4, %s3292_s5  }
0x1477 PF: > { %p3850_p13 = scmp.ge.s32.totalorder %s4087_s24, 2  ;;  %s3317_s29 = sand.u32 1, %s4075_s21  }
0x1478   : > { %s3318_s23 = scalar_lea.sflag [#allocation3], %s3317_s29 }
0x1479   : > { %p3847_p0 = pnand %p3850_p13, %p4228_p6 }
0x147b   : > { %p3848_p1 = pneg %p3847_p0 }
0x147d   : > { %4070 = dma.done.wait (%p3848_p1), %s3318_s23, 128  }
0x147e   : > { %4072 = vsyncadd (%p3848_p1), %s3318_s23, 4294967168  ;;  %s4756_s26 = sld [smem:[#allocation5_spill]]  ;;  %p26_p2 = scmp.ge.s32.totalorder %s4211_s27, 4  }
0x147f   : > { %s4757_s23 = sld [smem:[#allocation6_spill]]  ;;  %s4758_s21 = smov %s4079_s22 }
0x1480   : > { %s4760_s24 = smov %s4211_s27  ;;  %28 = sbr.rel (!%p26_p2) target bundleno = 10 (0xa), region = 131 }
0x1484   : > { %s4759_s22 = smov %s4756_s26 }
0x1485   :  { %3323 = vsyncpa [#allocation3], 1 }
0x1486   :  { %3325 = vsyncpa [#allocation3 + $0x1], 1 }

</bundles_post_ra>
